<compile_context>
chip_gen: v7x
topology: tpu7x:2x2x1
jax: 0.10.0
libtpu: 0.0.40
codegen_flags: <defaults>
</compile_context>

<pallas_src>
import functools

import jax
import jax.numpy as jnp
from jax import lax
from jax.experimental import pallas as pl
from jax.experimental.pallas import tpu as pltpu

# MXU operand dtype. bf16 is MXU-native on v5e/v6e/v7x; accumulation is f32 via
# preferred_element_type.  Verification tolerance is ~2e-2 accordingly (set to
# jnp.float32 for bit-tight checks).
MATMUL_DTYPE = jnp.bfloat16


# ----------------------------- wrapper-side packing (hoisted) -----------------------------
def _pack_weight_t(w):
    """(2, K, K, Cin, Cout) -> (2*Cout, K*K*2*Cin), spatial-last orientation.

    Rows = output channels [real Cout | imag Cout]; columns ordered [tap, (real Cin | imag Cin)].
    Per-tap block  [[ wr^T, -wi^T],
                    [ wi^T,  wr^T]]  ->  y_r = wr*x_r - wi*x_i ,  y_i = wi*x_r + wr*x_i.
    """
    _, K, _, Cin, Cout = w.shape
    wrT = jnp.transpose(w[0], (0, 1, 3, 2)).reshape(K * K, Cout, Cin)
    wiT = jnp.transpose(w[1], (0, 1, 3, 2)).reshape(K * K, Cout, Cin)
    top = jnp.concatenate([wrT, -wiT], axis=-1)      # rows producing real outputs
    bot = jnp.concatenate([wiT, wrT], axis=-1)       # rows producing imag outputs
    blk = jnp.concatenate([top, bot], axis=1)        # (K*K, 2*Cout, 2*Cin)
    return jnp.transpose(blk, (1, 0, 2)).reshape(2 * Cout, K * K * 2 * Cin)


def _pack_bias(b):
    """(2, Cout) -> (2*Cout, 1) column [b_real ; b_imag]; broadcasts over lanes."""
    return b.reshape(-1, 1).astype(jnp.float32)


def _tap_masks(H, W, K, dtype):
    """(K*K, H*W) 0/1 masks: tap (dy,dx) is valid at output pixel (h,w) iff the shifted
    source pixel (h+dy-p, w+dx-p) lies inside the image (== SAME zero padding)."""
    p = K // 2
    hh, ww = jnp.meshgrid(jnp.arange(H), jnp.arange(W), indexing="ij")
    hh, ww = hh.reshape(-1), ww.reshape(-1)
    rows = []
    for dy in range(K):
        for dx in range(K):
            ok = ((hh + dy - p >= 0) & (hh + dy - p < H) &
                  (ww + dx - p >= 0) & (ww + dx - p < W))
            rows.append(ok)
    return jnp.stack(rows).astype(dtype)


# -------------------------------------- fused kernel --------------------------------------
def _edsr_kernel(x_ref, m_ref, wh_ref, bh_ref, w1_ref, b1_ref, w2_ref, b2_ref,
                 wt_ref, bt_ref, o_ref, cols_ref,
                 *, W, K, num_blocks, negative_slope, res_scale):
    p = K // 2

    def lrelu(v):
        return jnp.where(v >= 0, v, negative_slope * v)

    def cconv(x, w, b):
        """Complex KxK SAME conv as ONE packed MXU matmul.

        x: (2*Cin, H*W) f32 value; w: (2*Cout, K*K*2*Cin) MATMUL_DTYPE; b: (2*Cout, 1) f32.
        Each tap is a masked lane shift of the flattened image, written into the
        preallocated `cols` scratch (no concat temp, no padded buffer, no reshapes).
        """
        C2 = x.shape[0]
        xb = x.astype(w.dtype)
        t = 0
        for dy in range(K):
            for dx in range(K):
                s = (dy - p) * W + (dx - p)            # flattened source offset
                shifted = xb if s == 0 else jnp.roll(xb, shift=-s, axis=1)
                cols_ref[t * C2:(t + 1) * C2, :] = shifted * m_ref[t:t + 1, :]
                t += 1
        y = jnp.dot(w, cols_ref[0:K * K * C2, :],
                    preferred_element_type=jnp.float32)   # (2*Cout, H*W) f32
        return y + b

    x_img = x_ref[0]                                                   # (2*Cin, HW) f32

    # head: conv3x3 + LeakyReLU
    head = lrelu(cconv(x_img, wh_ref[...], bh_ref[...]))               # (2*chans, HW)

    # body: fused residual blocks; running activation never leaves VMEM
    act = head
    for i in range(num_blocks):
        u = lrelu(cconv(act, w1_ref[i], b1_ref[i]))
        act = act + res_scale * cconv(u, w2_ref[i], b2_ref[i])

    # tail: (head + body) -> 1x1 complex conv -> global input skip, all fused
    ssum = (head + act).astype(wt_ref.dtype)
    y = jnp.dot(wt_ref[...], ssum, preferred_element_type=jnp.float32) + bt_ref[...]
    o_ref[0] = x_img + y


# ------------------------------------ model forward ------------------------------------
def init_params(key, in_chans, out_chans, chans, num_blocks):
    """Deterministic synthetic parameter init (shapes follow the PyTorch module)."""
    def conv_p(k, cin, cout, ksz):
        kw, kb = jax.random.split(k)
        scale = 0.1 / float(ksz * ksz * cin) ** 0.5
        w = jax.random.normal(kw, (2, ksz, ksz, cin, cout), jnp.float32) * scale
        b = jax.random.normal(kb, (2, cout), jnp.float32) * 0.01
        return w, b

    keys = jax.random.split(key, 2 + 2 * num_blocks)
    return {
        "head": conv_p(keys[0], in_chans, chans, 3),
        "body": [(conv_p(keys[1 + 2 * i], chans, chans, 3),
                  conv_p(keys[2 + 2 * i], chans, chans, 3))
                 for i in range(num_blocks)],
        "tail": conv_p(keys[1 + 2 * num_blocks], chans, out_chans, 1),
    }


def complex_edsr_forward(x_nchw, params, *, negative_slope=0.01, res_scale=1.0):
    """Forward pass of ComplexEDSR.  x_nchw: (N, 2, C_in, H, W)."""
    assert x_nchw.ndim == 5 and x_nchw.shape[1] == 2, "Invalid shape!"
    N, _, Cin, H, W = x_nchw.shape
    hw_, hb_ = params["head"]
    tw_, tb_ = params["tail"]
    K = hw_.shape[1]
    chans = hw_.shape[-1]
    Cout = tw_.shape[-1]
    num_blocks = len(params["body"])
    assert num_blocks >= 1
    assert Cin == Cout, "global skip requires in_chans == out_chans"
    assert tw_.shape[1] == 1, "tail must be a 1x1 conv"

    HW = H * W
    Cin2, Cb2, Cout2 = 2 * Cin, 2 * chans, 2 * Cout
    C2max = max(Cin2, Cb2)

    # packed-complex, spatial-last activations: (N, 2, C, H, W) -> (N, 2*C, H*W) is a
    # pure (free) reshape -- no wrapper transposes.
    x2 = x_nchw.reshape(N, Cin2, HW).astype(jnp.float32)

    # Pre-pack and pre-cast everything in the wrapper (nothing reformatted per grid step).
    wh = _pack_weight_t(hw_).astype(MATMUL_DTYPE)
    bh = _pack_bias(hb_)
    w1s = jnp.stack([_pack_weight_t(w1) for (w1, _), _ in params["body"]]).astype(MATMUL_DTYPE)
    b1s = jnp.stack([_pack_bias(b1) for (_, b1), _ in params["body"]])
    w2s = jnp.stack([_pack_weight_t(w2) for _, (w2, _) in params["body"]]).astype(MATMUL_DTYPE)
    b2s = jnp.stack([_pack_bias(b2) for _, (_, b2) in params["body"]])
    wt = _pack_weight_t(tw_).astype(MATMUL_DTYPE)            # (2*Cout, 2*chans)
    bt = _pack_bias(tb_)
    masks = _tap_masks(H, W, K, MATMUL_DTYPE)                 # (K*K, H*W)

    kern = functools.partial(
        _edsr_kernel, W=W, K=K, num_blocks=num_blocks,
        negative_slope=float(negative_slope), res_scale=float(res_scale))

    full2 = lambda n: (0, 0)
    full3 = lambda n: (0, 0, 0)

    out = pl.pallas_call(
        kern,
        out_shape=jax.ShapeDtypeStruct((N, Cout2, HW), jnp.float32),
        grid_spec=pltpu.PrefetchScalarGridSpec(
            num_scalar_prefetch=0,
            grid=(N,),
            in_specs=[
                pl.BlockSpec((1, Cin2, HW), lambda n: (n, 0, 0)),   # x
                pl.BlockSpec(masks.shape, full2),                   # tap masks
                pl.BlockSpec(wh.shape, full2), pl.BlockSpec(bh.shape, full2),
                pl.BlockSpec(w1s.shape, full3), pl.BlockSpec(b1s.shape, full3),
                pl.BlockSpec(w2s.shape, full3), pl.BlockSpec(b2s.shape, full3),
                pl.BlockSpec(wt.shape, full2), pl.BlockSpec(bt.shape, full2),
            ],
            out_specs=pl.BlockSpec((1, Cout2, HW), lambda n: (n, 0, 0)),
            scratch_shapes=[pltpu.VMEM((K * K * C2max, HW), MATMUL_DTYPE)],  # im2col cols
        ),
        compiler_params=pltpu.CompilerParams(dimension_semantics=("parallel",)),
    )(x2, masks, wh, bh, w1s, b1s, w2s, b2s, wt, bt)

    return out.reshape(N, 2, Cout, H, W)


# -------------------- pure-JAX reference (for verification) --------------------
def _ref_complex_conv(x, w, b):
    conv = lambda a, k: lax.conv_general_dilated(
        a, k, (1, 1), "SAME", dimension_numbers=("NHWC", "HWIO", "NHWC"))
    xr, xi = x[:, 0], x[:, 1]
    wr, wi = w[0], w[1]
    yr = conv(xr, wr) - conv(xi, wi) + b[0]
    yi = conv(xr, wi) + conv(xi, wr) + b[1]
    return jnp.stack([yr, yi], axis=1)


def _ref_forward(x_nchw, params, *, negative_slope, res_scale):
    lrelu = lambda t: jnp.where(t >= 0, t, negative_slope * t)
    x = jnp.transpose(x_nchw, (0, 1, 3, 4, 2))
    hw, hb = params["head"]
    out = lrelu(_ref_complex_conv(x, hw, hb))
    body = out
    for (w1, b1), (w2, b2) in params["body"]:
        t = lrelu(_ref_complex_conv(body, w1, b1))
        body = body + res_scale * _ref_complex_conv(t, w2, b2)
    out = out + body
    tw, tb = params["tail"]
    y = x + _ref_complex_conv(out, tw, tb)
    return jnp.transpose(y, (0, 1, 4, 2, 3))


if __name__ == "__main__":
    key = jax.random.PRNGKey(0)
    k_x, k_p = jax.random.split(key)

    # small shapes consistent with the module: in_chans == out_chans (global skip)
    N, C_in, C_out, chans, H, W = 2, 4, 4, 8, 16, 16
    num_blocks = 2
    negative_slope = 0.01
    res_scale = 1.0

    x = jax.random.normal(k_x, (N, 2, C_in, H, W), jnp.float32)
    params = init_params(k_p, C_in, C_out, chans, num_blocks)

    fwd = jax.jit(functools.partial(complex_edsr_forward,
                                    negative_slope=negative_slope,
                                    res_scale=res_scale))
    y = jax.block_until_ready(fwd(x, params))
    assert y.shape == (N, 2, C_out, H, W)

    y_ref = _ref_forward(x, params,
                         negative_slope=negative_slope, res_scale=res_scale)
    max_err = float(jnp.max(jnp.abs(y - y_ref)))
    # bf16 MXU operands with f32 accumulation -> ~2e-2 tolerance (see MATMUL_DTYPE note).
    assert bool(jnp.allclose(y, y_ref, rtol=2e-2, atol=2e-2)), max_err

    print("KERNEL_OK")
</pallas_src>

<mosaic_0001>
module attributes {stable_mosaic.version = 11 : i64} {
  func.func @_edsr_kernel(%arg0: i32, %arg1: memref<1x8x256xf32, #tpu.memory_space<vmem>>, %arg2: memref<9x256xbf16, #tpu.memory_space<vmem>>, %arg3: memref<16x72xbf16, #tpu.memory_space<vmem>>, %arg4: memref<16x1xf32, #tpu.memory_space<vmem>>, %arg5: memref<2x16x144xbf16, #tpu.memory_space<vmem>>, %arg6: memref<2x16x1xf32, #tpu.memory_space<vmem>>, %arg7: memref<2x16x144xbf16, #tpu.memory_space<vmem>>, %arg8: memref<2x16x1xf32, #tpu.memory_space<vmem>>, %arg9: memref<8x16xbf16, #tpu.memory_space<vmem>>, %arg10: memref<8x1xf32, #tpu.memory_space<vmem>>, %arg11: memref<1x8x256xf32, #tpu.memory_space<vmem>>, %arg12: memref<144x256xbf16, #tpu.memory_space<vmem>>) attributes {dimension_semantics = [#tpu.dimension_semantics<parallel>], iteration_bounds = array<i64: 2>, scalar_prefetch = 0 : i64, scratch_operands = 1 : i64, tpu.core_type = #tpu.core_type<tc>, window_params = [{transform_indices = @transform_0, window_bounds = array<i64: 1, 8, 256>}, {pipeline_mode = #tpu.pipeline_mode<synchronous>, transform_indices = @transform_1, window_bounds = array<i64: 9, 256>}, {pipeline_mode = #tpu.pipeline_mode<synchronous>, transform_indices = @transform_2, window_bounds = array<i64: 16, 72>}, {pipeline_mode = #tpu.pipeline_mode<synchronous>, transform_indices = @transform_3, window_bounds = array<i64: 16, 1>}, {pipeline_mode = #tpu.pipeline_mode<synchronous>, transform_indices = @transform_4, window_bounds = array<i64: 2, 16, 144>}, {pipeline_mode = #tpu.pipeline_mode<synchronous>, transform_indices = @transform_5, window_bounds = array<i64: 2, 16, 1>}, {pipeline_mode = #tpu.pipeline_mode<synchronous>, transform_indices = @transform_6, window_bounds = array<i64: 2, 16, 144>}, {pipeline_mode = #tpu.pipeline_mode<synchronous>, transform_indices = @transform_7, window_bounds = array<i64: 2, 16, 1>}, {pipeline_mode = #tpu.pipeline_mode<synchronous>, transform_indices = @transform_8, window_bounds = array<i64: 8, 16>}, {pipeline_mode = #tpu.pipeline_mode<synchronous>, transform_indices = @transform_9, window_bounds = array<i64: 8, 1>}, {transform_indices = @transform_10, window_bounds = array<i64: 1, 8, 256>}]} {
    %c0 = arith.constant 0 : index
    %c0_0 = arith.constant 0 : index
    %c0_1 = arith.constant 0 : index
    %0 = vector.load %arg1[%c0, %c0_0, %c0_1] : memref<1x8x256xf32, #tpu.memory_space<vmem>>, vector<1x8x256xf32>
    %1 = vector.shape_cast %0 : vector<1x8x256xf32> to vector<8x256xf32>
    %c0_2 = arith.constant 0 : index
    %c0_3 = arith.constant 0 : index
    %2 = vector.load %arg3[%c0_2, %c0_3] : memref<16x72xbf16, #tpu.memory_space<vmem>>, vector<16x72xbf16>
    %c0_4 = arith.constant 0 : index
    %c0_5 = arith.constant 0 : index
    %3 = vector.load %arg4[%c0_4, %c0_5] : memref<16x1xf32, #tpu.memory_space<vmem>>, vector<16x1xf32>
    %4 = arith.truncf %1 : vector<8x256xf32> to vector<8x256xbf16>
    %5 = vector.extract_strided_slice %4 {offsets = [0, 239], sizes = [8, 17], strides = [1, 1]} : vector<8x256xbf16> to vector<8x17xbf16>
    %6 = vector.extract_strided_slice %4 {offsets = [0, 0], sizes = [8, 239], strides = [1, 1]} : vector<8x256xbf16> to vector<8x239xbf16>
    %7 = tpu.concatenate %5, %6 in 1 : vector<8x17xbf16>, vector<8x239xbf16> -> vector<8x256xbf16>
    %c0_6 = arith.constant 0 : index
    %c0_7 = arith.constant 0 : index
    %8 = vector.load %arg2[%c0_6, %c0_7] : memref<9x256xbf16, #tpu.memory_space<vmem>>, vector<1x256xbf16>
    %9 = vector.broadcast %8 : vector<1x256xbf16> to vector<8x256xbf16>
    %10 = arith.mulf %7, %9 : vector<8x256xbf16>
    %c0_8 = arith.constant 0 : index
    %c0_9 = arith.constant 0 : index
    %11 = vector.load %arg12[%c0_8, %c0_9] : memref<144x256xbf16, #tpu.memory_space<vmem>>, vector<8x256xbf16>
    tpu.vector_store %arg12[%c0_8, %c0_9], %10 {strides = array<i32>} : memref<144x256xbf16, #tpu.memory_space<vmem>>, vector<8x256xbf16>,
    %12 = vector.extract_strided_slice %4 {offsets = [0, 240], sizes = [8, 16], strides = [1, 1]} : vector<8x256xbf16> to vector<8x16xbf16>
    %13 = vector.extract_strided_slice %4 {offsets = [0, 0], sizes = [8, 240], strides = [1, 1]} : vector<8x256xbf16> to vector<8x240xbf16>
    %14 = tpu.concatenate %12, %13 in 1 : vector<8x16xbf16>, vector<8x240xbf16> -> vector<8x256xbf16>
    %c1 = arith.constant 1 : index
    %c0_10 = arith.constant 0 : index
    %15 = vector.load %arg2[%c1, %c0_10] : memref<9x256xbf16, #tpu.memory_space<vmem>>, vector<1x256xbf16>
    %16 = vector.broadcast %15 : vector<1x256xbf16> to vector<8x256xbf16>
    %17 = arith.mulf %14, %16 : vector<8x256xbf16>
    %c8 = arith.constant 8 : index
    %c0_11 = arith.constant 0 : index
    %18 = vector.load %arg12[%c8, %c0_11] : memref<144x256xbf16, #tpu.memory_space<vmem>>, vector<8x256xbf16>
    tpu.vector_store %arg12[%c8, %c0_11], %17 {strides = array<i32>} : memref<144x256xbf16, #tpu.memory_space<vmem>>, vector<8x256xbf16>,
    %19 = vector.extract_strided_slice %4 {offsets = [0, 241], sizes = [8, 15], strides = [1, 1]} : vector<8x256xbf16> to vector<8x15xbf16>
    %20 = vector.extract_strided_slice %4 {offsets = [0, 0], sizes = [8, 241], strides = [1, 1]} : vector<8x256xbf16> to vector<8x241xbf16>
    %21 = tpu.concatenate %19, %20 in 1 : vector<8x15xbf16>, vector<8x241xbf16> -> vector<8x256xbf16>
    %c2 = arith.constant 2 : index
    %c0_12 = arith.constant 0 : index
    %22 = vector.load %arg2[%c2, %c0_12] : memref<9x256xbf16, #tpu.memory_space<vmem>>, vector<1x256xbf16>
    %23 = vector.broadcast %22 : vector<1x256xbf16> to vector<8x256xbf16>
    %24 = arith.mulf %21, %23 : vector<8x256xbf16>
    %c16 = arith.constant 16 : index
    %c0_13 = arith.constant 0 : index
    %25 = vector.load %arg12[%c16, %c0_13] : memref<144x256xbf16, #tpu.memory_space<vmem>>, vector<8x256xbf16>
    tpu.vector_store %arg12[%c16, %c0_13], %24 {strides = array<i32>} : memref<144x256xbf16, #tpu.memory_space<vmem>>, vector<8x256xbf16>,
    %26 = vector.extract_strided_slice %4 {offsets = [0, 255], sizes = [8, 1], strides = [1, 1]} : vector<8x256xbf16> to vector<8x1xbf16>
    %27 = vector.extract_strided_slice %4 {offsets = [0, 0], sizes = [8, 255], strides = [1, 1]} : vector<8x256xbf16> to vector<8x255xbf16>
    %28 = tpu.concatenate %26, %27 in 1 : vector<8x1xbf16>, vector<8x255xbf16> -> vector<8x256xbf16>
    %c3 = arith.constant 3 : index
    %c0_14 = arith.constant 0 : index
    %29 = vector.load %arg2[%c3, %c0_14] : memref<9x256xbf16, #tpu.memory_space<vmem>>, vector<1x256xbf16>
    %30 = vector.broadcast %29 : vector<1x256xbf16> to vector<8x256xbf16>
    %31 = arith.mulf %28, %30 : vector<8x256xbf16>
    %c24 = arith.constant 24 : index
    %c0_15 = arith.constant 0 : index
    %32 = vector.load %arg12[%c24, %c0_15] : memref<144x256xbf16, #tpu.memory_space<vmem>>, vector<8x256xbf16>
    tpu.vector_store %arg12[%c24, %c0_15], %31 {strides = array<i32>} : memref<144x256xbf16, #tpu.memory_space<vmem>>, vector<8x256xbf16>,
    %c4 = arith.constant 4 : index
    %c0_16 = arith.constant 0 : index
    %33 = vector.load %arg2[%c4, %c0_16] : memref<9x256xbf16, #tpu.memory_space<vmem>>, vector<1x256xbf16>
    %34 = vector.broadcast %33 : vector<1x256xbf16> to vector<8x256xbf16>
    %35 = arith.mulf %4, %34 : vector<8x256xbf16>
    %c32 = arith.constant 32 : index
    %c0_17 = arith.constant 0 : index
    %36 = vector.load %arg12[%c32, %c0_17] : memref<144x256xbf16, #tpu.memory_space<vmem>>, vector<8x256xbf16>
    tpu.vector_store %arg12[%c32, %c0_17], %35 {strides = array<i32>} : memref<144x256xbf16, #tpu.memory_space<vmem>>, vector<8x256xbf16>,
    %37 = vector.extract_strided_slice %4 {offsets = [0, 1], sizes = [8, 255], strides = [1, 1]} : vector<8x256xbf16> to vector<8x255xbf16>
    %38 = vector.extract_strided_slice %4 {offsets = [0, 0], sizes = [8, 1], strides = [1, 1]} : vector<8x256xbf16> to vector<8x1xbf16>
    %39 = tpu.concatenate %37, %38 in 1 : vector<8x255xbf16>, vector<8x1xbf16> -> vector<8x256xbf16>
    %c5 = arith.constant 5 : index
    %c0_18 = arith.constant 0 : index
    %40 = vector.load %arg2[%c5, %c0_18] : memref<9x256xbf16, #tpu.memory_space<vmem>>, vector<1x256xbf16>
    %41 = vector.broadcast %40 : vector<1x256xbf16> to vector<8x256xbf16>
    %42 = arith.mulf %39, %41 : vector<8x256xbf16>
    %c40 = arith.constant 40 : index
    %c0_19 = arith.constant 0 : index
    %43 = vector.load %arg12[%c40, %c0_19] : memref<144x256xbf16, #tpu.memory_space<vmem>>, vector<8x256xbf16>
    tpu.vector_store %arg12[%c40, %c0_19], %42 {strides = array<i32>} : memref<144x256xbf16, #tpu.memory_space<vmem>>, vector<8x256xbf16>,
    %44 = vector.extract_strided_slice %4 {offsets = [0, 15], sizes = [8, 241], strides = [1, 1]} : vector<8x256xbf16> to vector<8x241xbf16>
    %45 = vector.extract_strided_slice %4 {offsets = [0, 0], sizes = [8, 15], strides = [1, 1]} : vector<8x256xbf16> to vector<8x15xbf16>
    %46 = tpu.concatenate %44, %45 in 1 : vector<8x241xbf16>, vector<8x15xbf16> -> vector<8x256xbf16>
    %c6 = arith.constant 6 : index
    %c0_20 = arith.constant 0 : index
    %47 = vector.load %arg2[%c6, %c0_20] : memref<9x256xbf16, #tpu.memory_space<vmem>>, vector<1x256xbf16>
    %48 = vector.broadcast %47 : vector<1x256xbf16> to vector<8x256xbf16>
    %49 = arith.mulf %46, %48 : vector<8x256xbf16>
    %c48 = arith.constant 48 : index
    %c0_21 = arith.constant 0 : index
    %50 = vector.load %arg12[%c48, %c0_21] : memref<144x256xbf16, #tpu.memory_space<vmem>>, vector<8x256xbf16>
    tpu.vector_store %arg12[%c48, %c0_21], %49 {strides = array<i32>} : memref<144x256xbf16, #tpu.memory_space<vmem>>, vector<8x256xbf16>,
    %51 = vector.extract_strided_slice %4 {offsets = [0, 16], sizes = [8, 240], strides = [1, 1]} : vector<8x256xbf16> to vector<8x240xbf16>
    %52 = vector.extract_strided_slice %4 {offsets = [0, 0], sizes = [8, 16], strides = [1, 1]} : vector<8x256xbf16> to vector<8x16xbf16>
    %53 = tpu.concatenate %51, %52 in 1 : vector<8x240xbf16>, vector<8x16xbf16> -> vector<8x256xbf16>
    %c7 = arith.constant 7 : index
    %c0_22 = arith.constant 0 : index
    %54 = vector.load %arg2[%c7, %c0_22] : memref<9x256xbf16, #tpu.memory_space<vmem>>, vector<1x256xbf16>
    %55 = vector.broadcast %54 : vector<1x256xbf16> to vector<8x256xbf16>
    %56 = arith.mulf %53, %55 : vector<8x256xbf16>
    %c56 = arith.constant 56 : index
    %c0_23 = arith.constant 0 : index
    %57 = vector.load %arg12[%c56, %c0_23] : memref<144x256xbf16, #tpu.memory_space<vmem>>, vector<8x256xbf16>
    tpu.vector_store %arg12[%c56, %c0_23], %56 {strides = array<i32>} : memref<144x256xbf16, #tpu.memory_space<vmem>>, vector<8x256xbf16>,
    %58 = vector.extract_strided_slice %4 {offsets = [0, 17], sizes = [8, 239], strides = [1, 1]} : vector<8x256xbf16> to vector<8x239xbf16>
    %59 = vector.extract_strided_slice %4 {offsets = [0, 0], sizes = [8, 17], strides = [1, 1]} : vector<8x256xbf16> to vector<8x17xbf16>
    %60 = tpu.concatenate %58, %59 in 1 : vector<8x239xbf16>, vector<8x17xbf16> -> vector<8x256xbf16>
    %c8_24 = arith.constant 8 : index
    %c0_25 = arith.constant 0 : index
    %61 = vector.load %arg2[%c8_24, %c0_25] : memref<9x256xbf16, #tpu.memory_space<vmem>>, vector<1x256xbf16>
    %62 = vector.broadcast %61 : vector<1x256xbf16> to vector<8x256xbf16>
    %63 = arith.mulf %60, %62 : vector<8x256xbf16>
    %c64 = arith.constant 64 : index
    %c0_26 = arith.constant 0 : index
    %64 = vector.load %arg12[%c64, %c0_26] : memref<144x256xbf16, #tpu.memory_space<vmem>>, vector<8x256xbf16>
    tpu.vector_store %arg12[%c64, %c0_26], %63 {strides = array<i32>} : memref<144x256xbf16, #tpu.memory_space<vmem>>, vector<8x256xbf16>,
    %c0_27 = arith.constant 0 : index
    %c0_28 = arith.constant 0 : index
    %65 = vector.load %arg12[%c0_27, %c0_28] : memref<144x256xbf16, #tpu.memory_space<vmem>>, vector<72x256xbf16>
    %cst = arith.constant dense<0.000000e+00> : vector<16x256xf32>
    %66 = tpu.matmul %2, %65, %cst {dimension_numbers = #tpu.dot_dimension_numbers<[1], [0], [0], [1], [0, 0, 1, 1], [], []>} : vector<16x72xbf16>, vector<72x256xbf16>, vector<16x256xf32> -> vector<16x256xf32>
    %67 = vector.broadcast %3 : vector<16x1xf32> to vector<16x256xf32>
    %68 = arith.addf %66, %67 : vector<16x256xf32>
    %cst_29 = arith.constant 0.000000e+00 : f32
    %69 = vector.broadcast %cst_29 : f32 to vector<16x256xf32>
    %70 = arith.cmpf oge, %68, %69 : vector<16x256xf32>
    %cst_30 = arith.constant 0.00999999977 : f32
    %71 = vector.broadcast %cst_30 : f32 to vector<16x256xf32>
    %72 = arith.mulf %71, %68 : vector<16x256xf32>
    %73 = arith.select %70, %68, %72 : vector<16x256xi1>, vector<16x256xf32>
    %c0_31 = arith.constant 0 : index
    %c0_32 = arith.constant 0 : index
    %c0_33 = arith.constant 0 : index
    %74 = vector.load %arg5[%c0_31, %c0_32, %c0_33] : memref<2x16x144xbf16, #tpu.memory_space<vmem>>, vector<1x16x144xbf16>
    %75 = vector.shape_cast %74 : vector<1x16x144xbf16> to vector<16x144xbf16>
    %c0_34 = arith.constant 0 : index
    %c0_35 = arith.constant 0 : index
    %c0_36 = arith.constant 0 : index
    %76 = vector.load %arg6[%c0_34, %c0_35, %c0_36] : memref<2x16x1xf32, #tpu.memory_space<vmem>>, vector<1x16x1xf32>
    %77 = vector.shape_cast %76 : vector<1x16x1xf32> to vector<16x1xf32>
    %78 = arith.truncf %73 : vector<16x256xf32> to vector<16x256xbf16>
    %79 = vector.extract_strided_slice %78 {offsets = [0, 239], sizes = [16, 17], strides = [1, 1]} : vector<16x256xbf16> to vector<16x17xbf16>
    %80 = vector.extract_strided_slice %78 {offsets = [0, 0], sizes = [16, 239], strides = [1, 1]} : vector<16x256xbf16> to vector<16x239xbf16>
    %81 = tpu.concatenate %79, %80 in 1 : vector<16x17xbf16>, vector<16x239xbf16> -> vector<16x256xbf16>
    %c0_37 = arith.constant 0 : index
    %c0_38 = arith.constant 0 : index
    %82 = vector.load %arg2[%c0_37, %c0_38] : memref<9x256xbf16, #tpu.memory_space<vmem>>, vector<1x256xbf16>
    %83 = vector.broadcast %82 : vector<1x256xbf16> to vector<16x256xbf16>
    %84 = arith.mulf %81, %83 : vector<16x256xbf16>
    %c0_39 = arith.constant 0 : index
    %c0_40 = arith.constant 0 : index
    %85 = vector.load %arg12[%c0_39, %c0_40] : memref<144x256xbf16, #tpu.memory_space<vmem>>, vector<16x256xbf16>
    tpu.vector_store %arg12[%c0_39, %c0_40], %84 {strides = array<i32>} : memref<144x256xbf16, #tpu.memory_space<vmem>>, vector<16x256xbf16>,
    %86 = vector.extract_strided_slice %78 {offsets = [0, 240], sizes = [16, 16], strides = [1, 1]} : vector<16x256xbf16> to vector<16x16xbf16>
    %87 = vector.extract_strided_slice %78 {offsets = [0, 0], sizes = [16, 240], strides = [1, 1]} : vector<16x256xbf16> to vector<16x240xbf16>
    %88 = tpu.concatenate %86, %87 in 1 : vector<16x16xbf16>, vector<16x240xbf16> -> vector<16x256xbf16>
    %c1_41 = arith.constant 1 : index
    %c0_42 = arith.constant 0 : index
    %89 = vector.load %arg2[%c1_41, %c0_42] : memref<9x256xbf16, #tpu.memory_space<vmem>>, vector<1x256xbf16>
    %90 = vector.broadcast %89 : vector<1x256xbf16> to vector<16x256xbf16>
    %91 = arith.mulf %88, %90 : vector<16x256xbf16>
    %c16_43 = arith.constant 16 : index
    %c0_44 = arith.constant 0 : index
    %92 = vector.load %arg12[%c16_43, %c0_44] : memref<144x256xbf16, #tpu.memory_space<vmem>>, vector<16x256xbf16>
    tpu.vector_store %arg12[%c16_43, %c0_44], %91 {strides = array<i32>} : memref<144x256xbf16, #tpu.memory_space<vmem>>, vector<16x256xbf16>,
    %93 = vector.extract_strided_slice %78 {offsets = [0, 241], sizes = [16, 15], strides = [1, 1]} : vector<16x256xbf16> to vector<16x15xbf16>
    %94 = vector.extract_strided_slice %78 {offsets = [0, 0], sizes = [16, 241], strides = [1, 1]} : vector<16x256xbf16> to vector<16x241xbf16>
    %95 = tpu.concatenate %93, %94 in 1 : vector<16x15xbf16>, vector<16x241xbf16> -> vector<16x256xbf16>
    %c2_45 = arith.constant 2 : index
    %c0_46 = arith.constant 0 : index
    %96 = vector.load %arg2[%c2_45, %c0_46] : memref<9x256xbf16, #tpu.memory_space<vmem>>, vector<1x256xbf16>
    %97 = vector.broadcast %96 : vector<1x256xbf16> to vector<16x256xbf16>
    %98 = arith.mulf %95, %97 : vector<16x256xbf16>
    %c32_47 = arith.constant 32 : index
    %c0_48 = arith.constant 0 : index
    %99 = vector.load %arg12[%c32_47, %c0_48] : memref<144x256xbf16, #tpu.memory_space<vmem>>, vector<16x256xbf16>
    tpu.vector_store %arg12[%c32_47, %c0_48], %98 {strides = array<i32>} : memref<144x256xbf16, #tpu.memory_space<vmem>>, vector<16x256xbf16>,
    %100 = vector.extract_strided_slice %78 {offsets = [0, 255], sizes = [16, 1], strides = [1, 1]} : vector<16x256xbf16> to vector<16x1xbf16>
    %101 = vector.extract_strided_slice %78 {offsets = [0, 0], sizes = [16, 255], strides = [1, 1]} : vector<16x256xbf16> to vector<16x255xbf16>
    %102 = tpu.concatenate %100, %101 in 1 : vector<16x1xbf16>, vector<16x255xbf16> -> vector<16x256xbf16>
    %c3_49 = arith.constant 3 : index
    %c0_50 = arith.constant 0 : index
    %103 = vector.load %arg2[%c3_49, %c0_50] : memref<9x256xbf16, #tpu.memory_space<vmem>>, vector<1x256xbf16>
    %104 = vector.broadcast %103 : vector<1x256xbf16> to vector<16x256xbf16>
    %105 = arith.mulf %102, %104 : vector<16x256xbf16>
    %c48_51 = arith.constant 48 : index
    %c0_52 = arith.constant 0 : index
    %106 = vector.load %arg12[%c48_51, %c0_52] : memref<144x256xbf16, #tpu.memory_space<vmem>>, vector<16x256xbf16>
    tpu.vector_store %arg12[%c48_51, %c0_52], %105 {strides = array<i32>} : memref<144x256xbf16, #tpu.memory_space<vmem>>, vector<16x256xbf16>,
    %c4_53 = arith.constant 4 : index
    %c0_54 = arith.constant 0 : index
    %107 = vector.load %arg2[%c4_53, %c0_54] : memref<9x256xbf16, #tpu.memory_space<vmem>>, vector<1x256xbf16>
    %108 = vector.broadcast %107 : vector<1x256xbf16> to vector<16x256xbf16>
    %109 = arith.mulf %78, %108 : vector<16x256xbf16>
    %c64_55 = arith.constant 64 : index
    %c0_56 = arith.constant 0 : index
    %110 = vector.load %arg12[%c64_55, %c0_56] : memref<144x256xbf16, #tpu.memory_space<vmem>>, vector<16x256xbf16>
    tpu.vector_store %arg12[%c64_55, %c0_56], %109 {strides = array<i32>} : memref<144x256xbf16, #tpu.memory_space<vmem>>, vector<16x256xbf16>,
    %111 = vector.extract_strided_slice %78 {offsets = [0, 1], sizes = [16, 255], strides = [1, 1]} : vector<16x256xbf16> to vector<16x255xbf16>
    %112 = vector.extract_strided_slice %78 {offsets = [0, 0], sizes = [16, 1], strides = [1, 1]} : vector<16x256xbf16> to vector<16x1xbf16>
    %113 = tpu.concatenate %111, %112 in 1 : vector<16x255xbf16>, vector<16x1xbf16> -> vector<16x256xbf16>
    %c5_57 = arith.constant 5 : index
    %c0_58 = arith.constant 0 : index
    %114 = vector.load %arg2[%c5_57, %c0_58] : memref<9x256xbf16, #tpu.memory_space<vmem>>, vector<1x256xbf16>
    %115 = vector.broadcast %114 : vector<1x256xbf16> to vector<16x256xbf16>
    %116 = arith.mulf %113, %115 : vector<16x256xbf16>
    %c80 = arith.constant 80 : index
    %c0_59 = arith.constant 0 : index
    %117 = vector.load %arg12[%c80, %c0_59] : memref<144x256xbf16, #tpu.memory_space<vmem>>, vector<16x256xbf16>
    tpu.vector_store %arg12[%c80, %c0_59], %116 {strides = array<i32>} : memref<144x256xbf16, #tpu.memory_space<vmem>>, vector<16x256xbf16>,
    %118 = vector.extract_strided_slice %78 {offsets = [0, 15], sizes = [16, 241], strides = [1, 1]} : vector<16x256xbf16> to vector<16x241xbf16>
    %119 = vector.extract_strided_slice %78 {offsets = [0, 0], sizes = [16, 15], strides = [1, 1]} : vector<16x256xbf16> to vector<16x15xbf16>
    %120 = tpu.concatenate %118, %119 in 1 : vector<16x241xbf16>, vector<16x15xbf16> -> vector<16x256xbf16>
    %c6_60 = arith.constant 6 : index
    %c0_61 = arith.constant 0 : index
    %121 = vector.load %arg2[%c6_60, %c0_61] : memref<9x256xbf16, #tpu.memory_space<vmem>>, vector<1x256xbf16>
    %122 = vector.broadcast %121 : vector<1x256xbf16> to vector<16x256xbf16>
    %123 = arith.mulf %120, %122 : vector<16x256xbf16>
    %c96 = arith.constant 96 : index
    %c0_62 = arith.constant 0 : index
    %124 = vector.load %arg12[%c96, %c0_62] : memref<144x256xbf16, #tpu.memory_space<vmem>>, vector<16x256xbf16>
    tpu.vector_store %arg12[%c96, %c0_62], %123 {strides = array<i32>} : memref<144x256xbf16, #tpu.memory_space<vmem>>, vector<16x256xbf16>,
    %125 = vector.extract_strided_slice %78 {offsets = [0, 16], sizes = [16, 240], strides = [1, 1]} : vector<16x256xbf16> to vector<16x240xbf16>
    %126 = vector.extract_strided_slice %78 {offsets = [0, 0], sizes = [16, 16], strides = [1, 1]} : vector<16x256xbf16> to vector<16x16xbf16>
    %127 = tpu.concatenate %125, %126 in 1 : vector<16x240xbf16>, vector<16x16xbf16> -> vector<16x256xbf16>
    %c7_63 = arith.constant 7 : index
    %c0_64 = arith.constant 0 : index
    %128 = vector.load %arg2[%c7_63, %c0_64] : memref<9x256xbf16, #tpu.memory_space<vmem>>, vector<1x256xbf16>
    %129 = vector.broadcast %128 : vector<1x256xbf16> to vector<16x256xbf16>
    %130 = arith.mulf %127, %129 : vector<16x256xbf16>
    %c112 = arith.constant 112 : index
    %c0_65 = arith.constant 0 : index
    %131 = vector.load %arg12[%c112, %c0_65] : memref<144x256xbf16, #tpu.memory_space<vmem>>, vector<16x256xbf16>
    tpu.vector_store %arg12[%c112, %c0_65], %130 {strides = array<i32>} : memref<144x256xbf16, #tpu.memory_space<vmem>>, vector<16x256xbf16>,
    %132 = vector.extract_strided_slice %78 {offsets = [0, 17], sizes = [16, 239], strides = [1, 1]} : vector<16x256xbf16> to vector<16x239xbf16>
    %133 = vector.extract_strided_slice %78 {offsets = [0, 0], sizes = [16, 17], strides = [1, 1]} : vector<16x256xbf16> to vector<16x17xbf16>
    %134 = tpu.concatenate %132, %133 in 1 : vector<16x239xbf16>, vector<16x17xbf16> -> vector<16x256xbf16>
    %c8_66 = arith.constant 8 : index
    %c0_67 = arith.constant 0 : index
    %135 = vector.load %arg2[%c8_66, %c0_67] : memref<9x256xbf16, #tpu.memory_space<vmem>>, vector<1x256xbf16>
    %136 = vector.broadcast %135 : vector<1x256xbf16> to vector<16x256xbf16>
    %137 = arith.mulf %134, %136 : vector<16x256xbf16>
    %c128 = arith.constant 128 : index
    %c0_68 = arith.constant 0 : index
    %138 = vector.load %arg12[%c128, %c0_68] : memref<144x256xbf16, #tpu.memory_space<vmem>>, vector<16x256xbf16>
    tpu.vector_store %arg12[%c128, %c0_68], %137 {strides = array<i32>} : memref<144x256xbf16, #tpu.memory_space<vmem>>, vector<16x256xbf16>,
    %c0_69 = arith.constant 0 : index
    %c0_70 = arith.constant 0 : index
    %139 = vector.load %arg12[%c0_69, %c0_70] : memref<144x256xbf16, #tpu.memory_space<vmem>>, vector<144x256xbf16>
    %cst_71 = arith.constant dense<0.000000e+00> : vector<16x256xf32>
    %140 = tpu.matmul %75, %139, %cst_71 {dimension_numbers = #tpu.dot_dimension_numbers<[1], [0], [0], [1], [0, 0, 1, 1], [], []>} : vector<16x144xbf16>, vector<144x256xbf16>, vector<16x256xf32> -> vector<16x256xf32>
    %141 = vector.broadcast %77 : vector<16x1xf32> to vector<16x256xf32>
    %142 = arith.addf %140, %141 : vector<16x256xf32>
    %cst_72 = arith.constant 0.000000e+00 : f32
    %143 = vector.broadcast %cst_72 : f32 to vector<16x256xf32>
    %144 = arith.cmpf oge, %142, %143 : vector<16x256xf32>
    %cst_73 = arith.constant 0.00999999977 : f32
    %145 = vector.broadcast %cst_73 : f32 to vector<16x256xf32>
    %146 = arith.mulf %145, %142 : vector<16x256xf32>
    %147 = arith.select %144, %142, %146 : vector<16x256xi1>, vector<16x256xf32>
    %c0_74 = arith.constant 0 : index
    %c0_75 = arith.constant 0 : index
    %c0_76 = arith.constant 0 : index
    %148 = vector.load %arg7[%c0_74, %c0_75, %c0_76] : memref<2x16x144xbf16, #tpu.memory_space<vmem>>, vector<1x16x144xbf16>
    %149 = vector.shape_cast %148 : vector<1x16x144xbf16> to vector<16x144xbf16>
    %c0_77 = arith.constant 0 : index
    %c0_78 = arith.constant 0 : index
    %c0_79 = arith.constant 0 : index
    %150 = vector.load %arg8[%c0_77, %c0_78, %c0_79] : memref<2x16x1xf32, #tpu.memory_space<vmem>>, vector<1x16x1xf32>
    %151 = vector.shape_cast %150 : vector<1x16x1xf32> to vector<16x1xf32>
    %152 = arith.truncf %147 : vector<16x256xf32> to vector<16x256xbf16>
    %153 = vector.extract_strided_slice %152 {offsets = [0, 239], sizes = [16, 17], strides = [1, 1]} : vector<16x256xbf16> to vector<16x17xbf16>
    %154 = vector.extract_strided_slice %152 {offsets = [0, 0], sizes = [16, 239], strides = [1, 1]} : vector<16x256xbf16> to vector<16x239xbf16>
    %155 = tpu.concatenate %153, %154 in 1 : vector<16x17xbf16>, vector<16x239xbf16> -> vector<16x256xbf16>
    %c0_80 = arith.constant 0 : index
    %c0_81 = arith.constant 0 : index
    %156 = vector.load %arg2[%c0_80, %c0_81] : memref<9x256xbf16, #tpu.memory_space<vmem>>, vector<1x256xbf16>
    %157 = vector.broadcast %156 : vector<1x256xbf16> to vector<16x256xbf16>
    %158 = arith.mulf %155, %157 : vector<16x256xbf16>
    %c0_82 = arith.constant 0 : index
    %c0_83 = arith.constant 0 : index
    %159 = vector.load %arg12[%c0_82, %c0_83] : memref<144x256xbf16, #tpu.memory_space<vmem>>, vector<16x256xbf16>
    tpu.vector_store %arg12[%c0_82, %c0_83], %158 {strides = array<i32>} : memref<144x256xbf16, #tpu.memory_space<vmem>>, vector<16x256xbf16>,
    %160 = vector.extract_strided_slice %152 {offsets = [0, 240], sizes = [16, 16], strides = [1, 1]} : vector<16x256xbf16> to vector<16x16xbf16>
    %161 = vector.extract_strided_slice %152 {offsets = [0, 0], sizes = [16, 240], strides = [1, 1]} : vector<16x256xbf16> to vector<16x240xbf16>
    %162 = tpu.concatenate %160, %161 in 1 : vector<16x16xbf16>, vector<16x240xbf16> -> vector<16x256xbf16>
    %c1_84 = arith.constant 1 : index
    %c0_85 = arith.constant 0 : index
    %163 = vector.load %arg2[%c1_84, %c0_85] : memref<9x256xbf16, #tpu.memory_space<vmem>>, vector<1x256xbf16>
    %164 = vector.broadcast %163 : vector<1x256xbf16> to vector<16x256xbf16>
    %165 = arith.mulf %162, %164 : vector<16x256xbf16>
    %c16_86 = arith.constant 16 : index
    %c0_87 = arith.constant 0 : index
    %166 = vector.load %arg12[%c16_86, %c0_87] : memref<144x256xbf16, #tpu.memory_space<vmem>>, vector<16x256xbf16>
    tpu.vector_store %arg12[%c16_86, %c0_87], %165 {strides = array<i32>} : memref<144x256xbf16, #tpu.memory_space<vmem>>, vector<16x256xbf16>,
    %167 = vector.extract_strided_slice %152 {offsets = [0, 241], sizes = [16, 15], strides = [1, 1]} : vector<16x256xbf16> to vector<16x15xbf16>
    %168 = vector.extract_strided_slice %152 {offsets = [0, 0], sizes = [16, 241], strides = [1, 1]} : vector<16x256xbf16> to vector<16x241xbf16>
    %169 = tpu.concatenate %167, %168 in 1 : vector<16x15xbf16>, vector<16x241xbf16> -> vector<16x256xbf16>
    %c2_88 = arith.constant 2 : index
    %c0_89 = arith.constant 0 : index
    %170 = vector.load %arg2[%c2_88, %c0_89] : memref<9x256xbf16, #tpu.memory_space<vmem>>, vector<1x256xbf16>
    %171 = vector.broadcast %170 : vector<1x256xbf16> to vector<16x256xbf16>
    %172 = arith.mulf %169, %171 : vector<16x256xbf16>
    %c32_90 = arith.constant 32 : index
    %c0_91 = arith.constant 0 : index
    %173 = vector.load %arg12[%c32_90, %c0_91] : memref<144x256xbf16, #tpu.memory_space<vmem>>, vector<16x256xbf16>
    tpu.vector_store %arg12[%c32_90, %c0_91], %172 {strides = array<i32>} : memref<144x256xbf16, #tpu.memory_space<vmem>>, vector<16x256xbf16>,
    %174 = vector.extract_strided_slice %152 {offsets = [0, 255], sizes = [16, 1], strides = [1, 1]} : vector<16x256xbf16> to vector<16x1xbf16>
    %175 = vector.extract_strided_slice %152 {offsets = [0, 0], sizes = [16, 255], strides = [1, 1]} : vector<16x256xbf16> to vector<16x255xbf16>
    %176 = tpu.concatenate %174, %175 in 1 : vector<16x1xbf16>, vector<16x255xbf16> -> vector<16x256xbf16>
    %c3_92 = arith.constant 3 : index
    %c0_93 = arith.constant 0 : index
    %177 = vector.load %arg2[%c3_92, %c0_93] : memref<9x256xbf16, #tpu.memory_space<vmem>>, vector<1x256xbf16>
    %178 = vector.broadcast %177 : vector<1x256xbf16> to vector<16x256xbf16>
    %179 = arith.mulf %176, %178 : vector<16x256xbf16>
    %c48_94 = arith.constant 48 : index
    %c0_95 = arith.constant 0 : index
    %180 = vector.load %arg12[%c48_94, %c0_95] : memref<144x256xbf16, #tpu.memory_space<vmem>>, vector<16x256xbf16>
    tpu.vector_store %arg12[%c48_94, %c0_95], %179 {strides = array<i32>} : memref<144x256xbf16, #tpu.memory_space<vmem>>, vector<16x256xbf16>,
    %c4_96 = arith.constant 4 : index
    %c0_97 = arith.constant 0 : index
    %181 = vector.load %arg2[%c4_96, %c0_97] : memref<9x256xbf16, #tpu.memory_space<vmem>>, vector<1x256xbf16>
    %182 = vector.broadcast %181 : vector<1x256xbf16> to vector<16x256xbf16>
    %183 = arith.mulf %152, %182 : vector<16x256xbf16>
    %c64_98 = arith.constant 64 : index
    %c0_99 = arith.constant 0 : index
    %184 = vector.load %arg12[%c64_98, %c0_99] : memref<144x256xbf16, #tpu.memory_space<vmem>>, vector<16x256xbf16>
    tpu.vector_store %arg12[%c64_98, %c0_99], %183 {strides = array<i32>} : memref<144x256xbf16, #tpu.memory_space<vmem>>, vector<16x256xbf16>,
    %185 = vector.extract_strided_slice %152 {offsets = [0, 1], sizes = [16, 255], strides = [1, 1]} : vector<16x256xbf16> to vector<16x255xbf16>
    %186 = vector.extract_strided_slice %152 {offsets = [0, 0], sizes = [16, 1], strides = [1, 1]} : vector<16x256xbf16> to vector<16x1xbf16>
    %187 = tpu.concatenate %185, %186 in 1 : vector<16x255xbf16>, vector<16x1xbf16> -> vector<16x256xbf16>
    %c5_100 = arith.constant 5 : index
    %c0_101 = arith.constant 0 : index
    %188 = vector.load %arg2[%c5_100, %c0_101] : memref<9x256xbf16, #tpu.memory_space<vmem>>, vector<1x256xbf16>
    %189 = vector.broadcast %188 : vector<1x256xbf16> to vector<16x256xbf16>
    %190 = arith.mulf %187, %189 : vector<16x256xbf16>
    %c80_102 = arith.constant 80 : index
    %c0_103 = arith.constant 0 : index
    %191 = vector.load %arg12[%c80_102, %c0_103] : memref<144x256xbf16, #tpu.memory_space<vmem>>, vector<16x256xbf16>
    tpu.vector_store %arg12[%c80_102, %c0_103], %190 {strides = array<i32>} : memref<144x256xbf16, #tpu.memory_space<vmem>>, vector<16x256xbf16>,
    %192 = vector.extract_strided_slice %152 {offsets = [0, 15], sizes = [16, 241], strides = [1, 1]} : vector<16x256xbf16> to vector<16x241xbf16>
    %193 = vector.extract_strided_slice %152 {offsets = [0, 0], sizes = [16, 15], strides = [1, 1]} : vector<16x256xbf16> to vector<16x15xbf16>
    %194 = tpu.concatenate %192, %193 in 1 : vector<16x241xbf16>, vector<16x15xbf16> -> vector<16x256xbf16>
    %c6_104 = arith.constant 6 : index
    %c0_105 = arith.constant 0 : index
    %195 = vector.load %arg2[%c6_104, %c0_105] : memref<9x256xbf16, #tpu.memory_space<vmem>>, vector<1x256xbf16>
    %196 = vector.broadcast %195 : vector<1x256xbf16> to vector<16x256xbf16>
    %197 = arith.mulf %194, %196 : vector<16x256xbf16>
    %c96_106 = arith.constant 96 : index
    %c0_107 = arith.constant 0 : index
    %198 = vector.load %arg12[%c96_106, %c0_107] : memref<144x256xbf16, #tpu.memory_space<vmem>>, vector<16x256xbf16>
    tpu.vector_store %arg12[%c96_106, %c0_107], %197 {strides = array<i32>} : memref<144x256xbf16, #tpu.memory_space<vmem>>, vector<16x256xbf16>,
    %199 = vector.extract_strided_slice %152 {offsets = [0, 16], sizes = [16, 240], strides = [1, 1]} : vector<16x256xbf16> to vector<16x240xbf16>
    %200 = vector.extract_strided_slice %152 {offsets = [0, 0], sizes = [16, 16], strides = [1, 1]} : vector<16x256xbf16> to vector<16x16xbf16>
    %201 = tpu.concatenate %199, %200 in 1 : vector<16x240xbf16>, vector<16x16xbf16> -> vector<16x256xbf16>
    %c7_108 = arith.constant 7 : index
    %c0_109 = arith.constant 0 : index
    %202 = vector.load %arg2[%c7_108, %c0_109] : memref<9x256xbf16, #tpu.memory_space<vmem>>, vector<1x256xbf16>
    %203 = vector.broadcast %202 : vector<1x256xbf16> to vector<16x256xbf16>
    %204 = arith.mulf %201, %203 : vector<16x256xbf16>
    %c112_110 = arith.constant 112 : index
    %c0_111 = arith.constant 0 : index
    %205 = vector.load %arg12[%c112_110, %c0_111] : memref<144x256xbf16, #tpu.memory_space<vmem>>, vector<16x256xbf16>
    tpu.vector_store %arg12[%c112_110, %c0_111], %204 {strides = array<i32>} : memref<144x256xbf16, #tpu.memory_space<vmem>>, vector<16x256xbf16>,
    %206 = vector.extract_strided_slice %152 {offsets = [0, 17], sizes = [16, 239], strides = [1, 1]} : vector<16x256xbf16> to vector<16x239xbf16>
    %207 = vector.extract_strided_slice %152 {offsets = [0, 0], sizes = [16, 17], strides = [1, 1]} : vector<16x256xbf16> to vector<16x17xbf16>
    %208 = tpu.concatenate %206, %207 in 1 : vector<16x239xbf16>, vector<16x17xbf16> -> vector<16x256xbf16>
    %c8_112 = arith.constant 8 : index
    %c0_113 = arith.constant 0 : index
    %209 = vector.load %arg2[%c8_112, %c0_113] : memref<9x256xbf16, #tpu.memory_space<vmem>>, vector<1x256xbf16>
    %210 = vector.broadcast %209 : vector<1x256xbf16> to vector<16x256xbf16>
    %211 = arith.mulf %208, %210 : vector<16x256xbf16>
    %c128_114 = arith.constant 128 : index
    %c0_115 = arith.constant 0 : index
    %212 = vector.load %arg12[%c128_114, %c0_115] : memref<144x256xbf16, #tpu.memory_space<vmem>>, vector<16x256xbf16>
    tpu.vector_store %arg12[%c128_114, %c0_115], %211 {strides = array<i32>} : memref<144x256xbf16, #tpu.memory_space<vmem>>, vector<16x256xbf16>,
    %c0_116 = arith.constant 0 : index
    %c0_117 = arith.constant 0 : index
    %213 = vector.load %arg12[%c0_116, %c0_117] : memref<144x256xbf16, #tpu.memory_space<vmem>>, vector<144x256xbf16>
    %cst_118 = arith.constant dense<0.000000e+00> : vector<16x256xf32>
    %214 = tpu.matmul %149, %213, %cst_118 {dimension_numbers = #tpu.dot_dimension_numbers<[1], [0], [0], [1], [0, 0, 1, 1], [], []>} : vector<16x144xbf16>, vector<144x256xbf16>, vector<16x256xf32> -> vector<16x256xf32>
    %215 = vector.broadcast %151 : vector<16x1xf32> to vector<16x256xf32>
    %216 = arith.addf %214, %215 : vector<16x256xf32>
    %cst_119 = arith.constant 1.000000e+00 : f32
    %217 = vector.broadcast %cst_119 : f32 to vector<16x256xf32>
    %218 = arith.mulf %217, %216 : vector<16x256xf32>
    %219 = arith.addf %73, %218 : vector<16x256xf32>
    %c1_120 = arith.constant 1 : index
    %c0_121 = arith.constant 0 : index
    %c0_122 = arith.constant 0 : index
    %220 = vector.load %arg5[%c1_120, %c0_121, %c0_122] : memref<2x16x144xbf16, #tpu.memory_space<vmem>>, vector<1x16x144xbf16>
    %221 = vector.shape_cast %220 : vector<1x16x144xbf16> to vector<16x144xbf16>
    %c1_123 = arith.constant 1 : index
    %c0_124 = arith.constant 0 : index
    %c0_125 = arith.constant 0 : index
    %222 = vector.load %arg6[%c1_123, %c0_124, %c0_125] : memref<2x16x1xf32, #tpu.memory_space<vmem>>, vector<1x16x1xf32>
    %223 = vector.shape_cast %222 : vector<1x16x1xf32> to vector<16x1xf32>
    %224 = arith.truncf %219 : vector<16x256xf32> to vector<16x256xbf16>
    %225 = vector.extract_strided_slice %224 {offsets = [0, 239], sizes = [16, 17], strides = [1, 1]} : vector<16x256xbf16> to vector<16x17xbf16>
    %226 = vector.extract_strided_slice %224 {offsets = [0, 0], sizes = [16, 239], strides = [1, 1]} : vector<16x256xbf16> to vector<16x239xbf16>
    %227 = tpu.concatenate %225, %226 in 1 : vector<16x17xbf16>, vector<16x239xbf16> -> vector<16x256xbf16>
    %c0_126 = arith.constant 0 : index
    %c0_127 = arith.constant 0 : index
    %228 = vector.load %arg2[%c0_126, %c0_127] : memref<9x256xbf16, #tpu.memory_space<vmem>>, vector<1x256xbf16>
    %229 = vector.broadcast %228 : vector<1x256xbf16> to vector<16x256xbf16>
    %230 = arith.mulf %227, %229 : vector<16x256xbf16>
    %c0_128 = arith.constant 0 : index
    %c0_129 = arith.constant 0 : index
    %231 = vector.load %arg12[%c0_128, %c0_129] : memref<144x256xbf16, #tpu.memory_space<vmem>>, vector<16x256xbf16>
    tpu.vector_store %arg12[%c0_128, %c0_129], %230 {strides = array<i32>} : memref<144x256xbf16, #tpu.memory_space<vmem>>, vector<16x256xbf16>,
    %232 = vector.extract_strided_slice %224 {offsets = [0, 240], sizes = [16, 16], strides = [1, 1]} : vector<16x256xbf16> to vector<16x16xbf16>
    %233 = vector.extract_strided_slice %224 {offsets = [0, 0], sizes = [16, 240], strides = [1, 1]} : vector<16x256xbf16> to vector<16x240xbf16>
    %234 = tpu.concatenate %232, %233 in 1 : vector<16x16xbf16>, vector<16x240xbf16> -> vector<16x256xbf16>
    %c1_130 = arith.constant 1 : index
    %c0_131 = arith.constant 0 : index
    %235 = vector.load %arg2[%c1_130, %c0_131] : memref<9x256xbf16, #tpu.memory_space<vmem>>, vector<1x256xbf16>
    %236 = vector.broadcast %235 : vector<1x256xbf16> to vector<16x256xbf16>
    %237 = arith.mulf %234, %236 : vector<16x256xbf16>
    %c16_132 = arith.constant 16 : index
    %c0_133 = arith.constant 0 : index
    %238 = vector.load %arg12[%c16_132, %c0_133] : memref<144x256xbf16, #tpu.memory_space<vmem>>, vector<16x256xbf16>
    tpu.vector_store %arg12[%c16_132, %c0_133], %237 {strides = array<i32>} : memref<144x256xbf16, #tpu.memory_space<vmem>>, vector<16x256xbf16>,
    %239 = vector.extract_strided_slice %224 {offsets = [0, 241], sizes = [16, 15], strides = [1, 1]} : vector<16x256xbf16> to vector<16x15xbf16>
    %240 = vector.extract_strided_slice %224 {offsets = [0, 0], sizes = [16, 241], strides = [1, 1]} : vector<16x256xbf16> to vector<16x241xbf16>
    %241 = tpu.concatenate %239, %240 in 1 : vector<16x15xbf16>, vector<16x241xbf16> -> vector<16x256xbf16>
    %c2_134 = arith.constant 2 : index
    %c0_135 = arith.constant 0 : index
    %242 = vector.load %arg2[%c2_134, %c0_135] : memref<9x256xbf16, #tpu.memory_space<vmem>>, vector<1x256xbf16>
    %243 = vector.broadcast %242 : vector<1x256xbf16> to vector<16x256xbf16>
    %244 = arith.mulf %241, %243 : vector<16x256xbf16>
    %c32_136 = arith.constant 32 : index
    %c0_137 = arith.constant 0 : index
    %245 = vector.load %arg12[%c32_136, %c0_137] : memref<144x256xbf16, #tpu.memory_space<vmem>>, vector<16x256xbf16>
    tpu.vector_store %arg12[%c32_136, %c0_137], %244 {strides = array<i32>} : memref<144x256xbf16, #tpu.memory_space<vmem>>, vector<16x256xbf16>,
    %246 = vector.extract_strided_slice %224 {offsets = [0, 255], sizes = [16, 1], strides = [1, 1]} : vector<16x256xbf16> to vector<16x1xbf16>
    %247 = vector.extract_strided_slice %224 {offsets = [0, 0], sizes = [16, 255], strides = [1, 1]} : vector<16x256xbf16> to vector<16x255xbf16>
    %248 = tpu.concatenate %246, %247 in 1 : vector<16x1xbf16>, vector<16x255xbf16> -> vector<16x256xbf16>
    %c3_138 = arith.constant 3 : index
    %c0_139 = arith.constant 0 : index
    %249 = vector.load %arg2[%c3_138, %c0_139] : memref<9x256xbf16, #tpu.memory_space<vmem>>, vector<1x256xbf16>
    %250 = vector.broadcast %249 : vector<1x256xbf16> to vector<16x256xbf16>
    %251 = arith.mulf %248, %250 : vector<16x256xbf16>
    %c48_140 = arith.constant 48 : index
    %c0_141 = arith.constant 0 : index
    %252 = vector.load %arg12[%c48_140, %c0_141] : memref<144x256xbf16, #tpu.memory_space<vmem>>, vector<16x256xbf16>
    tpu.vector_store %arg12[%c48_140, %c0_141], %251 {strides = array<i32>} : memref<144x256xbf16, #tpu.memory_space<vmem>>, vector<16x256xbf16>,
    %c4_142 = arith.constant 4 : index
    %c0_143 = arith.constant 0 : index
    %253 = vector.load %arg2[%c4_142, %c0_143] : memref<9x256xbf16, #tpu.memory_space<vmem>>, vector<1x256xbf16>
    %254 = vector.broadcast %253 : vector<1x256xbf16> to vector<16x256xbf16>
    %255 = arith.mulf %224, %254 : vector<16x256xbf16>
    %c64_144 = arith.constant 64 : index
    %c0_145 = arith.constant 0 : index
    %256 = vector.load %arg12[%c64_144, %c0_145] : memref<144x256xbf16, #tpu.memory_space<vmem>>, vector<16x256xbf16>
    tpu.vector_store %arg12[%c64_144, %c0_145], %255 {strides = array<i32>} : memref<144x256xbf16, #tpu.memory_space<vmem>>, vector<16x256xbf16>,
    %257 = vector.extract_strided_slice %224 {offsets = [0, 1], sizes = [16, 255], strides = [1, 1]} : vector<16x256xbf16> to vector<16x255xbf16>
    %258 = vector.extract_strided_slice %224 {offsets = [0, 0], sizes = [16, 1], strides = [1, 1]} : vector<16x256xbf16> to vector<16x1xbf16>
    %259 = tpu.concatenate %257, %258 in 1 : vector<16x255xbf16>, vector<16x1xbf16> -> vector<16x256xbf16>
    %c5_146 = arith.constant 5 : index
    %c0_147 = arith.constant 0 : index
    %260 = vector.load %arg2[%c5_146, %c0_147] : memref<9x256xbf16, #tpu.memory_space<vmem>>, vector<1x256xbf16>
    %261 = vector.broadcast %260 : vector<1x256xbf16> to vector<16x256xbf16>
    %262 = arith.mulf %259, %261 : vector<16x256xbf16>
    %c80_148 = arith.constant 80 : index
    %c0_149 = arith.constant 0 : index
    %263 = vector.load %arg12[%c80_148, %c0_149] : memref<144x256xbf16, #tpu.memory_space<vmem>>, vector<16x256xbf16>
    tpu.vector_store %arg12[%c80_148, %c0_149], %262 {strides = array<i32>} : memref<144x256xbf16, #tpu.memory_space<vmem>>, vector<16x256xbf16>,
    %264 = vector.extract_strided_slice %224 {offsets = [0, 15], sizes = [16, 241], strides = [1, 1]} : vector<16x256xbf16> to vector<16x241xbf16>
    %265 = vector.extract_strided_slice %224 {offsets = [0, 0], sizes = [16, 15], strides = [1, 1]} : vector<16x256xbf16> to vector<16x15xbf16>
    %266 = tpu.concatenate %264, %265 in 1 : vector<16x241xbf16>, vector<16x15xbf16> -> vector<16x256xbf16>
    %c6_150 = arith.constant 6 : index
    %c0_151 = arith.constant 0 : index
    %267 = vector.load %arg2[%c6_150, %c0_151] : memref<9x256xbf16, #tpu.memory_space<vmem>>, vector<1x256xbf16>
    %268 = vector.broadcast %267 : vector<1x256xbf16> to vector<16x256xbf16>
    %269 = arith.mulf %266, %268 : vector<16x256xbf16>
    %c96_152 = arith.constant 96 : index
    %c0_153 = arith.constant 0 : index
    %270 = vector.load %arg12[%c96_152, %c0_153] : memref<144x256xbf16, #tpu.memory_space<vmem>>, vector<16x256xbf16>
    tpu.vector_store %arg12[%c96_152, %c0_153], %269 {strides = array<i32>} : memref<144x256xbf16, #tpu.memory_space<vmem>>, vector<16x256xbf16>,
    %271 = vector.extract_strided_slice %224 {offsets = [0, 16], sizes = [16, 240], strides = [1, 1]} : vector<16x256xbf16> to vector<16x240xbf16>
    %272 = vector.extract_strided_slice %224 {offsets = [0, 0], sizes = [16, 16], strides = [1, 1]} : vector<16x256xbf16> to vector<16x16xbf16>
    %273 = tpu.concatenate %271, %272 in 1 : vector<16x240xbf16>, vector<16x16xbf16> -> vector<16x256xbf16>
    %c7_154 = arith.constant 7 : index
    %c0_155 = arith.constant 0 : index
    %274 = vector.load %arg2[%c7_154, %c0_155] : memref<9x256xbf16, #tpu.memory_space<vmem>>, vector<1x256xbf16>
    %275 = vector.broadcast %274 : vector<1x256xbf16> to vector<16x256xbf16>
    %276 = arith.mulf %273, %275 : vector<16x256xbf16>
    %c112_156 = arith.constant 112 : index
    %c0_157 = arith.constant 0 : index
    %277 = vector.load %arg12[%c112_156, %c0_157] : memref<144x256xbf16, #tpu.memory_space<vmem>>, vector<16x256xbf16>
    tpu.vector_store %arg12[%c112_156, %c0_157], %276 {strides = array<i32>} : memref<144x256xbf16, #tpu.memory_space<vmem>>, vector<16x256xbf16>,
    %278 = vector.extract_strided_slice %224 {offsets = [0, 17], sizes = [16, 239], strides = [1, 1]} : vector<16x256xbf16> to vector<16x239xbf16>
    %279 = vector.extract_strided_slice %224 {offsets = [0, 0], sizes = [16, 17], strides = [1, 1]} : vector<16x256xbf16> to vector<16x17xbf16>
    %280 = tpu.concatenate %278, %279 in 1 : vector<16x239xbf16>, vector<16x17xbf16> -> vector<16x256xbf16>
    %c8_158 = arith.constant 8 : index
    %c0_159 = arith.constant 0 : index
    %281 = vector.load %arg2[%c8_158, %c0_159] : memref<9x256xbf16, #tpu.memory_space<vmem>>, vector<1x256xbf16>
    %282 = vector.broadcast %281 : vector<1x256xbf16> to vector<16x256xbf16>
    %283 = arith.mulf %280, %282 : vector<16x256xbf16>
    %c128_160 = arith.constant 128 : index
    %c0_161 = arith.constant 0 : index
    %284 = vector.load %arg12[%c128_160, %c0_161] : memref<144x256xbf16, #tpu.memory_space<vmem>>, vector<16x256xbf16>
    tpu.vector_store %arg12[%c128_160, %c0_161], %283 {strides = array<i32>} : memref<144x256xbf16, #tpu.memory_space<vmem>>, vector<16x256xbf16>,
    %c0_162 = arith.constant 0 : index
    %c0_163 = arith.constant 0 : index
    %285 = vector.load %arg12[%c0_162, %c0_163] : memref<144x256xbf16, #tpu.memory_space<vmem>>, vector<144x256xbf16>
    %cst_164 = arith.constant dense<0.000000e+00> : vector<16x256xf32>
    %286 = tpu.matmul %221, %285, %cst_164 {dimension_numbers = #tpu.dot_dimension_numbers<[1], [0], [0], [1], [0, 0, 1, 1], [], []>} : vector<16x144xbf16>, vector<144x256xbf16>, vector<16x256xf32> -> vector<16x256xf32>
    %287 = vector.broadcast %223 : vector<16x1xf32> to vector<16x256xf32>
    %288 = arith.addf %286, %287 : vector<16x256xf32>
    %cst_165 = arith.constant 0.000000e+00 : f32
    %289 = vector.broadcast %cst_165 : f32 to vector<16x256xf32>
    %290 = arith.cmpf oge, %288, %289 : vector<16x256xf32>
    %cst_166 = arith.constant 0.00999999977 : f32
    %291 = vector.broadcast %cst_166 : f32 to vector<16x256xf32>
    %292 = arith.mulf %291, %288 : vector<16x256xf32>
    %293 = arith.select %290, %288, %292 : vector<16x256xi1>, vector<16x256xf32>
    %c1_167 = arith.constant 1 : index
    %c0_168 = arith.constant 0 : index
    %c0_169 = arith.constant 0 : index
    %294 = vector.load %arg7[%c1_167, %c0_168, %c0_169] : memref<2x16x144xbf16, #tpu.memory_space<vmem>>, vector<1x16x144xbf16>
    %295 = vector.shape_cast %294 : vector<1x16x144xbf16> to vector<16x144xbf16>
    %c1_170 = arith.constant 1 : index
    %c0_171 = arith.constant 0 : index
    %c0_172 = arith.constant 0 : index
    %296 = vector.load %arg8[%c1_170, %c0_171, %c0_172] : memref<2x16x1xf32, #tpu.memory_space<vmem>>, vector<1x16x1xf32>
    %297 = vector.shape_cast %296 : vector<1x16x1xf32> to vector<16x1xf32>
    %298 = arith.truncf %293 : vector<16x256xf32> to vector<16x256xbf16>
    %299 = vector.extract_strided_slice %298 {offsets = [0, 239], sizes = [16, 17], strides = [1, 1]} : vector<16x256xbf16> to vector<16x17xbf16>
    %300 = vector.extract_strided_slice %298 {offsets = [0, 0], sizes = [16, 239], strides = [1, 1]} : vector<16x256xbf16> to vector<16x239xbf16>
    %301 = tpu.concatenate %299, %300 in 1 : vector<16x17xbf16>, vector<16x239xbf16> -> vector<16x256xbf16>
    %c0_173 = arith.constant 0 : index
    %c0_174 = arith.constant 0 : index
    %302 = vector.load %arg2[%c0_173, %c0_174] : memref<9x256xbf16, #tpu.memory_space<vmem>>, vector<1x256xbf16>
    %303 = vector.broadcast %302 : vector<1x256xbf16> to vector<16x256xbf16>
    %304 = arith.mulf %301, %303 : vector<16x256xbf16>
    %c0_175 = arith.constant 0 : index
    %c0_176 = arith.constant 0 : index
    %305 = vector.load %arg12[%c0_175, %c0_176] : memref<144x256xbf16, #tpu.memory_space<vmem>>, vector<16x256xbf16>
    tpu.vector_store %arg12[%c0_175, %c0_176], %304 {strides = array<i32>} : memref<144x256xbf16, #tpu.memory_space<vmem>>, vector<16x256xbf16>,
    %306 = vector.extract_strided_slice %298 {offsets = [0, 240], sizes = [16, 16], strides = [1, 1]} : vector<16x256xbf16> to vector<16x16xbf16>
    %307 = vector.extract_strided_slice %298 {offsets = [0, 0], sizes = [16, 240], strides = [1, 1]} : vector<16x256xbf16> to vector<16x240xbf16>
    %308 = tpu.concatenate %306, %307 in 1 : vector<16x16xbf16>, vector<16x240xbf16> -> vector<16x256xbf16>
    %c1_177 = arith.constant 1 : index
    %c0_178 = arith.constant 0 : index
    %309 = vector.load %arg2[%c1_177, %c0_178] : memref<9x256xbf16, #tpu.memory_space<vmem>>, vector<1x256xbf16>
    %310 = vector.broadcast %309 : vector<1x256xbf16> to vector<16x256xbf16>
    %311 = arith.mulf %308, %310 : vector<16x256xbf16>
    %c16_179 = arith.constant 16 : index
    %c0_180 = arith.constant 0 : index
    %312 = vector.load %arg12[%c16_179, %c0_180] : memref<144x256xbf16, #tpu.memory_space<vmem>>, vector<16x256xbf16>
    tpu.vector_store %arg12[%c16_179, %c0_180], %311 {strides = array<i32>} : memref<144x256xbf16, #tpu.memory_space<vmem>>, vector<16x256xbf16>,
    %313 = vector.extract_strided_slice %298 {offsets = [0, 241], sizes = [16, 15], strides = [1, 1]} : vector<16x256xbf16> to vector<16x15xbf16>
    %314 = vector.extract_strided_slice %298 {offsets = [0, 0], sizes = [16, 241], strides = [1, 1]} : vector<16x256xbf16> to vector<16x241xbf16>
    %315 = tpu.concatenate %313, %314 in 1 : vector<16x15xbf16>, vector<16x241xbf16> -> vector<16x256xbf16>
    %c2_181 = arith.constant 2 : index
    %c0_182 = arith.constant 0 : index
    %316 = vector.load %arg2[%c2_181, %c0_182] : memref<9x256xbf16, #tpu.memory_space<vmem>>, vector<1x256xbf16>
    %317 = vector.broadcast %316 : vector<1x256xbf16> to vector<16x256xbf16>
    %318 = arith.mulf %315, %317 : vector<16x256xbf16>
    %c32_183 = arith.constant 32 : index
    %c0_184 = arith.constant 0 : index
    %319 = vector.load %arg12[%c32_183, %c0_184] : memref<144x256xbf16, #tpu.memory_space<vmem>>, vector<16x256xbf16>
    tpu.vector_store %arg12[%c32_183, %c0_184], %318 {strides = array<i32>} : memref<144x256xbf16, #tpu.memory_space<vmem>>, vector<16x256xbf16>,
    %320 = vector.extract_strided_slice %298 {offsets = [0, 255], sizes = [16, 1], strides = [1, 1]} : vector<16x256xbf16> to vector<16x1xbf16>
    %321 = vector.extract_strided_slice %298 {offsets = [0, 0], sizes = [16, 255], strides = [1, 1]} : vector<16x256xbf16> to vector<16x255xbf16>
    %322 = tpu.concatenate %320, %321 in 1 : vector<16x1xbf16>, vector<16x255xbf16> -> vector<16x256xbf16>
    %c3_185 = arith.constant 3 : index
    %c0_186 = arith.constant 0 : index
    %323 = vector.load %arg2[%c3_185, %c0_186] : memref<9x256xbf16, #tpu.memory_space<vmem>>, vector<1x256xbf16>
    %324 = vector.broadcast %323 : vector<1x256xbf16> to vector<16x256xbf16>
    %325 = arith.mulf %322, %324 : vector<16x256xbf16>
    %c48_187 = arith.constant 48 : index
    %c0_188 = arith.constant 0 : index
    %326 = vector.load %arg12[%c48_187, %c0_188] : memref<144x256xbf16, #tpu.memory_space<vmem>>, vector<16x256xbf16>
    tpu.vector_store %arg12[%c48_187, %c0_188], %325 {strides = array<i32>} : memref<144x256xbf16, #tpu.memory_space<vmem>>, vector<16x256xbf16>,
    %c4_189 = arith.constant 4 : index
    %c0_190 = arith.constant 0 : index
    %327 = vector.load %arg2[%c4_189, %c0_190] : memref<9x256xbf16, #tpu.memory_space<vmem>>, vector<1x256xbf16>
    %328 = vector.broadcast %327 : vector<1x256xbf16> to vector<16x256xbf16>
    %329 = arith.mulf %298, %328 : vector<16x256xbf16>
    %c64_191 = arith.constant 64 : index
    %c0_192 = arith.constant 0 : index
    %330 = vector.load %arg12[%c64_191, %c0_192] : memref<144x256xbf16, #tpu.memory_space<vmem>>, vector<16x256xbf16>
    tpu.vector_store %arg12[%c64_191, %c0_192], %329 {strides = array<i32>} : memref<144x256xbf16, #tpu.memory_space<vmem>>, vector<16x256xbf16>,
    %331 = vector.extract_strided_slice %298 {offsets = [0, 1], sizes = [16, 255], strides = [1, 1]} : vector<16x256xbf16> to vector<16x255xbf16>
    %332 = vector.extract_strided_slice %298 {offsets = [0, 0], sizes = [16, 1], strides = [1, 1]} : vector<16x256xbf16> to vector<16x1xbf16>
    %333 = tpu.concatenate %331, %332 in 1 : vector<16x255xbf16>, vector<16x1xbf16> -> vector<16x256xbf16>
    %c5_193 = arith.constant 5 : index
    %c0_194 = arith.constant 0 : index
    %334 = vector.load %arg2[%c5_193, %c0_194] : memref<9x256xbf16, #tpu.memory_space<vmem>>, vector<1x256xbf16>
    %335 = vector.broadcast %334 : vector<1x256xbf16> to vector<16x256xbf16>
    %336 = arith.mulf %333, %335 : vector<16x256xbf16>
    %c80_195 = arith.constant 80 : index
    %c0_196 = arith.constant 0 : index
    %337 = vector.load %arg12[%c80_195, %c0_196] : memref<144x256xbf16, #tpu.memory_space<vmem>>, vector<16x256xbf16>
    tpu.vector_store %arg12[%c80_195, %c0_196], %336 {strides = array<i32>} : memref<144x256xbf16, #tpu.memory_space<vmem>>, vector<16x256xbf16>,
    %338 = vector.extract_strided_slice %298 {offsets = [0, 15], sizes = [16, 241], strides = [1, 1]} : vector<16x256xbf16> to vector<16x241xbf16>
    %339 = vector.extract_strided_slice %298 {offsets = [0, 0], sizes = [16, 15], strides = [1, 1]} : vector<16x256xbf16> to vector<16x15xbf16>
    %340 = tpu.concatenate %338, %339 in 1 : vector<16x241xbf16>, vector<16x15xbf16> -> vector<16x256xbf16>
    %c6_197 = arith.constant 6 : index
    %c0_198 = arith.constant 0 : index
    %341 = vector.load %arg2[%c6_197, %c0_198] : memref<9x256xbf16, #tpu.memory_space<vmem>>, vector<1x256xbf16>
    %342 = vector.broadcast %341 : vector<1x256xbf16> to vector<16x256xbf16>
    %343 = arith.mulf %340, %342 : vector<16x256xbf16>
    %c96_199 = arith.constant 96 : index
    %c0_200 = arith.constant 0 : index
    %344 = vector.load %arg12[%c96_199, %c0_200] : memref<144x256xbf16, #tpu.memory_space<vmem>>, vector<16x256xbf16>
    tpu.vector_store %arg12[%c96_199, %c0_200], %343 {strides = array<i32>} : memref<144x256xbf16, #tpu.memory_space<vmem>>, vector<16x256xbf16>,
    %345 = vector.extract_strided_slice %298 {offsets = [0, 16], sizes = [16, 240], strides = [1, 1]} : vector<16x256xbf16> to vector<16x240xbf16>
    %346 = vector.extract_strided_slice %298 {offsets = [0, 0], sizes = [16, 16], strides = [1, 1]} : vector<16x256xbf16> to vector<16x16xbf16>
    %347 = tpu.concatenate %345, %346 in 1 : vector<16x240xbf16>, vector<16x16xbf16> -> vector<16x256xbf16>
    %c7_201 = arith.constant 7 : index
    %c0_202 = arith.constant 0 : index
    %348 = vector.load %arg2[%c7_201, %c0_202] : memref<9x256xbf16, #tpu.memory_space<vmem>>, vector<1x256xbf16>
    %349 = vector.broadcast %348 : vector<1x256xbf16> to vector<16x256xbf16>
    %350 = arith.mulf %347, %349 : vector<16x256xbf16>
    %c112_203 = arith.constant 112 : index
    %c0_204 = arith.constant 0 : index
    %351 = vector.load %arg12[%c112_203, %c0_204] : memref<144x256xbf16, #tpu.memory_space<vmem>>, vector<16x256xbf16>
    tpu.vector_store %arg12[%c112_203, %c0_204], %350 {strides = array<i32>} : memref<144x256xbf16, #tpu.memory_space<vmem>>, vector<16x256xbf16>,
    %352 = vector.extract_strided_slice %298 {offsets = [0, 17], sizes = [16, 239], strides = [1, 1]} : vector<16x256xbf16> to vector<16x239xbf16>
    %353 = vector.extract_strided_slice %298 {offsets = [0, 0], sizes = [16, 17], strides = [1, 1]} : vector<16x256xbf16> to vector<16x17xbf16>
    %354 = tpu.concatenate %352, %353 in 1 : vector<16x239xbf16>, vector<16x17xbf16> -> vector<16x256xbf16>
    %c8_205 = arith.constant 8 : index
    %c0_206 = arith.constant 0 : index
    %355 = vector.load %arg2[%c8_205, %c0_206] : memref<9x256xbf16, #tpu.memory_space<vmem>>, vector<1x256xbf16>
    %356 = vector.broadcast %355 : vector<1x256xbf16> to vector<16x256xbf16>
    %357 = arith.mulf %354, %356 : vector<16x256xbf16>
    %c128_207 = arith.constant 128 : index
    %c0_208 = arith.constant 0 : index
    %358 = vector.load %arg12[%c128_207, %c0_208] : memref<144x256xbf16, #tpu.memory_space<vmem>>, vector<16x256xbf16>
    tpu.vector_store %arg12[%c128_207, %c0_208], %357 {strides = array<i32>} : memref<144x256xbf16, #tpu.memory_space<vmem>>, vector<16x256xbf16>,
    %c0_209 = arith.constant 0 : index
    %c0_210 = arith.constant 0 : index
    %359 = vector.load %arg12[%c0_209, %c0_210] : memref<144x256xbf16, #tpu.memory_space<vmem>>, vector<144x256xbf16>
    %cst_211 = arith.constant dense<0.000000e+00> : vector<16x256xf32>
    %360 = tpu.matmul %295, %359, %cst_211 {dimension_numbers = #tpu.dot_dimension_numbers<[1], [0], [0], [1], [0, 0, 1, 1], [], []>} : vector<16x144xbf16>, vector<144x256xbf16>, vector<16x256xf32> -> vector<16x256xf32>
    %361 = vector.broadcast %297 : vector<16x1xf32> to vector<16x256xf32>
    %362 = arith.addf %360, %361 : vector<16x256xf32>
    %cst_212 = arith.constant 1.000000e+00 : f32
    %363 = vector.broadcast %cst_212 : f32 to vector<16x256xf32>
    %364 = arith.mulf %363, %362 : vector<16x256xf32>
    %365 = arith.addf %219, %364 : vector<16x256xf32>
    %366 = arith.addf %73, %365 : vector<16x256xf32>
    %367 = arith.truncf %366 : vector<16x256xf32> to vector<16x256xbf16>
    %c0_213 = arith.constant 0 : index
    %c0_214 = arith.constant 0 : index
    %368 = vector.load %arg9[%c0_213, %c0_214] : memref<8x16xbf16, #tpu.memory_space<vmem>>, vector<8x16xbf16>
    %cst_215 = arith.constant dense<0.000000e+00> : vector<8x256xf32>
    %369 = tpu.matmul %368, %367, %cst_215 {dimension_numbers = #tpu.dot_dimension_numbers<[1], [0], [0], [1], [0, 0, 1, 1], [], []>} : vector<8x16xbf16>, vector<16x256xbf16>, vector<8x256xf32> -> vector<8x256xf32>
    %c0_216 = arith.constant 0 : index
    %c0_217 = arith.constant 0 : index
    %370 = vector.load %arg10[%c0_216, %c0_217] : memref<8x1xf32, #tpu.memory_space<vmem>>, vector<8x1xf32>
    %371 = vector.broadcast %370 : vector<8x1xf32> to vector<8x256xf32>
    %372 = arith.addf %369, %371 : vector<8x256xf32>
    %373 = arith.addf %1, %372 : vector<8x256xf32>
    %c0_218 = arith.constant 0 : index
    %c0_219 = arith.constant 0 : index
    %c0_220 = arith.constant 0 : index
    %374 = vector.load %arg11[%c0_218, %c0_219, %c0_220] : memref<1x8x256xf32, #tpu.memory_space<vmem>>, vector<1x8x256xf32>
    %375 = vector.shape_cast %374 : vector<1x8x256xf32> to vector<8x256xf32>
    %376 = vector.shape_cast %373 : vector<8x256xf32> to vector<1x8x256xf32>
    tpu.vector_store %arg11[%c0_218, %c0_219, %c0_220], %376 {strides = array<i32>} : memref<1x8x256xf32, #tpu.memory_space<vmem>>, vector<1x8x256xf32>,
    return
  }
  func.func @transform_0(%arg0: i32) -> (i32, i32, i32) {
    %c0_i32 = arith.constant 0 : i32
    %c0_i32_0 = arith.constant 0 : i32
    %c0_i32_1 = arith.constant 0 : i32
    return %arg0, %c0_i32, %c0_i32_0 : i32, i32, i32
  }
  func.func @transform_1(%arg0: i32) -> (i32, i32) {
    %c0_i32 = arith.constant 0 : i32
    %c0_i32_0 = arith.constant 0 : i32
    %c0_i32_1 = arith.constant 0 : i32
    return %c0_i32, %c0_i32_0 : i32, i32
  }
  func.func @transform_2(%arg0: i32) -> (i32, i32) {
    %c0_i32 = arith.constant 0 : i32
    %c0_i32_0 = arith.constant 0 : i32
    %c0_i32_1 = arith.constant 0 : i32
    return %c0_i32, %c0_i32_0 : i32, i32
  }
  func.func @transform_3(%arg0: i32) -> (i32, i32) {
    %c0_i32 = arith.constant 0 : i32
    %c0_i32_0 = arith.constant 0 : i32
    %c0_i32_1 = arith.constant 0 : i32
    return %c0_i32, %c0_i32_0 : i32, i32
  }
  func.func @transform_4(%arg0: i32) -> (i32, i32, i32) {
    %c0_i32 = arith.constant 0 : i32
    %c0_i32_0 = arith.constant 0 : i32
    %c0_i32_1 = arith.constant 0 : i32
    %c0_i32_2 = arith.constant 0 : i32
    return %c0_i32, %c0_i32_0, %c0_i32_1 : i32, i32, i32
  }
  func.func @transform_5(%arg0: i32) -> (i32, i32, i32) {
    %c0_i32 = arith.constant 0 : i32
    %c0_i32_0 = arith.constant 0 : i32
    %c0_i32_1 = arith.constant 0 : i32
    %c0_i32_2 = arith.constant 0 : i32
    return %c0_i32, %c0_i32_0, %c0_i32_1 : i32, i32, i32
  }
  func.func @transform_6(%arg0: i32) -> (i32, i32, i32) {
    %c0_i32 = arith.constant 0 : i32
    %c0_i32_0 = arith.constant 0 : i32
    %c0_i32_1 = arith.constant 0 : i32
    %c0_i32_2 = arith.constant 0 : i32
    return %c0_i32, %c0_i32_0, %c0_i32_1 : i32, i32, i32
  }
  func.func @transform_7(%arg0: i32) -> (i32, i32, i32) {
    %c0_i32 = arith.constant 0 : i32
    %c0_i32_0 = arith.constant 0 : i32
    %c0_i32_1 = arith.constant 0 : i32
    %c0_i32_2 = arith.constant 0 : i32
    return %c0_i32, %c0_i32_0, %c0_i32_1 : i32, i32, i32
  }
  func.func @transform_8(%arg0: i32) -> (i32, i32) {
    %c0_i32 = arith.constant 0 : i32
    %c0_i32_0 = arith.constant 0 : i32
    %c0_i32_1 = arith.constant 0 : i32
    return %c0_i32, %c0_i32_0 : i32, i32
  }
  func.func @transform_9(%arg0: i32) -> (i32, i32) {
    %c0_i32 = arith.constant 0 : i32
    %c0_i32_0 = arith.constant 0 : i32
    %c0_i32_1 = arith.constant 0 : i32
    return %c0_i32, %c0_i32_0 : i32, i32
  }
  func.func @transform_10(%arg0: i32) -> (i32, i32, i32) {
    %c0_i32 = arith.constant 0 : i32
    %c0_i32_0 = arith.constant 0 : i32
    %c0_i32_1 = arith.constant 0 : i32
    return %arg0, %c0_i32, %c0_i32_0 : i32, i32, i32
  }
}

</mosaic_0001>

<bundles_post_ra>
// kernel: complex_edsr_forward.1
= control target key start
LH: loop header
LB: loop body
LE: loop exit
PB: predicated region body
PF: predicated region fallthrough
CT: control target
= control target key end

     0   :  { %s2861_s13 = smov 0   ;;  %s3472_s0 = inlined_call_operand.vmem [shape: f32[2,8,256], index: 0, kind: input, shape index: {}]   ;;  %s3473_s1 = inlined_call_operand.vmem [shape: bf16[9,256], index: 1, kind: input, shape index: {}]   ;;  %s3474_s2 = inlined_call_operand.vmem [shape: bf16[16,72], index: 2, kind: input, shape index: {}]   ;;  %s3475_s3 = inlined_call_operand.vmem [shape: f32[16,1], index: 3, kind: input, shape index: {}]   ;;  %s3476_s4 = inlined_call_operand.vmem [shape: bf16[2,16,144], index: 4, kind: input, shape index: {}]   ;;  %s3477_s5 = inlined_call_operand.vmem [shape: f32[2,16,1], index: 5, kind: input, shape index: {}]   ;;  %s3478_s6 = inlined_call_operand.vmem [shape: bf16[2,16,144], index: 6, kind: input, shape index: {}]   ;;  %s3479_s7 = inlined_call_operand.vmem [shape: f32[2,16,1], index: 7, kind: input, shape index: {}]   ;;  %s3480_s8 = inlined_call_operand.vmem [shape: bf16[8,16], index: 8, kind: input, shape index: {}]   ;;  %s3481_s9 = inlined_call_operand.vmem [shape: f32[8,1], index: 9, kind: input, shape index: {}]   ;;  %s3482_s10 = inlined_call_operand.vmem [shape: f32[2,8,256], index: 10, kind: output, shape index: {}]  }
   0x1 LB: > { %s2538_s14 = sadd.s32 4294967295, %s2795_s13   ;;  %p2542_p0 = scmp.ge.s32.totalorder %s2795_s13, 1  ;;  %s2795_s13 = sphi %s2861_s13, %s20_s13  }
   0x2   : > { %p312_p1 = scmp.lt.s32.totalorder %s2795_s13, 3 }
   0x4   : > { %p313_p2 = pnand %p2542_p0, %p312_p1 }
   0x5   : > { %p350_p3 = scmp.lt.s32.totalorder (!%p313_p2), %s2538_s14, 1  ;;  %v392_v3 = vlaneseq (!%p313_p2)  ;;  %v531_v4 = vld [vmem:[%s3473_s1] sm:$0x44] (!%p313_p2)  ;;  %s2797_s21 = smov (!%p313_p2), 17   ;;  %v2805_v16 = vmov (!%p313_p2), 0   ;;  %v366_v18 = vld [vmem:[%s3475_s3 + $0x8] sm:$0xff] (!%p313_p2) }
   0x6   : > { %316 = sbr.rel (%p313_p2) target bundleno = 2125 (0x84d), region = 60  ;;  %s2798_s22 = smov (!%p313_p2), 16   ;;  %v2556_v6 = vcombine.high (!%p313_p2), %v531_v4, %v531_v4  ;;  %v2555_v8 = vcombine.low (!%p313_p2), %v531_v4, %v531_v4  ;;  %783 = vmatprep.mubr.bf16.mxu0 (!%p313_p2), %v2805_v16  ;;  %2682 = vset.pattern.permute.xlu0 (!%p313_p2), %v2805_v16  ;;  %v365_v17 = vld [vmem:[%s3475_s3] sm:$0xff] (!%p313_p2)  ;;  %vm375_vm0 = vcmask (!%p313_p2), 138240   ;;  %vm411_vm1 = vcmask (!%p313_p2), 130048  }
   0x7   : > { %v2886_v7 = vshrl.u32 (!%p313_p2), %v392_v3, 7  ;;  %s2799_s23 = smov (!%p313_p2), 1   ;;  %s2800_s24 = smov (!%p313_p2), 15   ;;  %2683 = vset.pattern.permute.xlu1 (!%p313_p2), %v2805_v16  ;;  %v419_v19 = vld [vmem:[%s3473_s1] sm:$0x11] (!%p313_p2)  ;;  %vm491_vm2 = vcmask (!%p313_p2), 7168  }
   0x8   : > { %v545_v9 = vpack.i.b16 (!%p313_p2), %v2556_v6, %v2556_v6  ;;  %v538_v11 = vpack.i.b16 (!%p313_p2), %v2555_v8, %v2555_v8  ;;  %s2801_s25 = smov (!%p313_p2), 127   ;;  %s2802_s26 = smov (!%p313_p2), 112   ;;  %v499_v20 = vld [vmem:[%s3473_s1] sm:$0x22] (!%p313_p2)  ;;  %v383_v21 = vld [vmem:[%s3473_s1] sm:$0x11] (!%p313_p2)  ;;  %v2549_v22 = vcombine.low (!%p313_p2), %v419_v19, %v419_v19  ;;  %v2550_v23 = vcombine.high (!%p313_p2), %v419_v19, %v419_v19 }
   0x9   : > { %v2891_v10 = vsub.s32 (!%p313_p2), 2, %v2886_v7  ;;  %s2803_s27 = smov (!%p313_p2), 113   ;;  %s3484_s28 = smov (!%p313_p2), 111   ;;  %v2553_v24 = vcombine.low (!%p313_p2), %v499_v20, %v499_v20  ;;  %v2554_v25 = vcombine.high (!%p313_p2), %v499_v20, %v499_v20  ;;  %v2547_v26 = vcombine.low (!%p313_p2), %v383_v21, %v383_v21  ;;  %v463_v32 = vld [vmem:[%s3473_s1] sm:$0x22] (!%p313_p2) }
   0xa   : > { %v2548_v27 = vcombine.high (!%p313_p2), %v383_v21, %v383_v21  ;;  %v426_v28 = vshrl.u32 (!%p313_p2), %v2549_v22, 16  ;;  %v434_v29 = vshrl.u32 (!%p313_p2), %v2550_v23, 16  ;;  %v567_v35 = vld [vmem:[%s3473_s1] sm:$0x44] (!%p313_p2)  ;;  %v2932_v36 = vsub.s32 (!%p313_p2), 0, %v2886_v7 }
   0xb   : > { %v550_v12 = vrot.slane (!%p313_p2), %v545_v9, %v2891_v10  ;;  %v543_v14 = vrot.slane (!%p313_p2), %v538_v11, %v2891_v10  ;;  %v506_v30 = vshrl.u32 (!%p313_p2), %v2553_v24, 16  ;;  %v514_v31 = vshrl.u32 (!%p313_p2), %v2554_v25, 16  ;;  %v647_v48 = vld [vmem:[%s3473_s1] sm:$0x88] (!%p313_p2) }
   0xc   : > { %v390_v33 = vpack.i.b16 (!%p313_p2), %v2547_v26, %v2547_v26  ;;  %v397_v34 = vpack.i.b16 (!%p313_p2), %v2548_v27, %v2548_v27  ;;  %v427_v37 = vpack.i.b16 (!%p313_p2), %v426_v28, %v426_v28  ;;  %v435_v38 = vpack.i.b16 (!%p313_p2), %v434_v29, %v434_v29  ;;  %v611_v24 = vld [vmem:[%s3473_s1] sm:$0x88] (!%p313_p2) }
   0xd   : > { %s3489_s14 = smov (!%p350_p3, %s2538_s14), 1  ;;  %v2935_v39 = vsub.s32 1, %v2886_v7  ;;  %v507_v40 = vpack.i.b16 %v506_v30, %v506_v30  ;;  %v515_v41 = vpack.i.b16 %v514_v31, %v514_v31  ;;  %v2551_v42 = vcombine.low %v463_v32, %v463_v32 }
   0xe   : > { %s3483_s15 = sshll.u32 %s3489_s14, 4  ;;  %v2552_v43 = vcombine.high %v463_v32, %v463_v32  ;;  %v2557_v46 = vcombine.low %v567_v35, %v567_v35  ;;  %v2558_v47 = vcombine.high %v567_v35, %v567_v35  ;;  %v395_v49 = vrot.slane %v390_v33, %v2932_v36 }
   0xf   : > { %s2877_s18 = scalar_lea.vmem %s3472_s0, %s3483_s15  ;;  %v402_v50 = vrot.slane %v397_v34, %v2932_v36  ;;  %v432_v51 = vrot.slane %v427_v37, %v2932_v36  ;;  %v440_v52 = vrot.slane %v435_v38, %v2932_v36  ;;  %v512_v53 = vrot.slane %v507_v40, %v2935_v39  ;;  %s3486_s15 = smov 111  }
  0x10   : > { %v362_v0 = vld [vmem:[%s2877_s18 + $0x8] sm:$0xff]  ;;  %v361_v1 = vld [vmem:[%s2877_s18] sm:$0xff]  ;;  %v520_v54 = vrot.slane %v515_v41, %v2935_v39  ;;  %v470_v55 = vpack.i.b16 %v2551_v42, %v2551_v42  ;;  %v477_v56 = vpack.i.b16 %v2552_v43, %v2552_v43  ;;  %v574_v59 = vshrl.u32 %v2557_v46, 16 }
  0x11   : > { %v368_v2 = vpack.c.bf16 %v362_v0, %v362_v0  ;;  %v367_v5 = vpack.c.bf16 %v361_v1, %v361_v1  ;;  %v582_v60 = vshrl.u32 %v2558_v47, 16  ;;  %v2561_v61 = vcombine.low %v647_v48, %v647_v48  ;;  %v691_v41 = vld [vmem:[%s3473_s1 + $0x8] sm:$0x11] }
  0x12   : > { %v2562_v62 = vcombine.high %v647_v48, %v647_v48  ;;  %vm455_vm3 = vcmask 121856   ;;  %v482_v19 = vrot.slane %v477_v56, %v2935_v39  ;;  %v575_v22 = vpack.i.b16 %v574_v59, %v574_v59 }
  0x13   : > { %370 = vrot.lane.b32.xlu1 %v368_v2, %s2797_s21  ;;  %407 = vrot.lane.b32.xlu0 %v368_v2, %s2798_s22  ;;  %v552_v13 = vmul.bf16 %v550_v12, %v368_v2  ;;  %v551_v15 = vmul.bf16 %v543_v14, %v367_v5  ;;  %v583_v23 = vpack.i.b16 %v582_v60, %v582_v60  ;;  %vm559_vm4 = vcmask 1039360  }
  0x14   : > { %v662_v14 = vshrl.u32 %v2562_v62, 16  ;;  %v2958_v25 = vsub.s32 3, %v2886_v7  ;;  %v2559_v34 = vcombine.low %v611_v24, %v611_v24  ;;  %v2560_v35 = vcombine.high %v611_v24, %v611_v24 }
  0x15   : > { %554 = vst [vmem:[#allocation2 + $0x28] sm:$0xf] %v552_v13  ;;  %553 = vst [vmem:[#allocation2 + $0x20] sm:$0xf] %v551_v15  ;;  %v654_v13 = vshrl.u32 %v2561_v61, 16  ;;  %v580_v40 = vrot.slane %v575_v22, %v2891_v10  ;;  %v588_v7 = vrot.slane %v583_v23, %v2891_v10  ;;  %vm639_vm5 = vcmask 916480  }
  0x16   : > { %v663_v31 = vpack.i.b16 %v662_v14, %v662_v14  ;;  %vm603_vm6 = vcmask 924672   ;;  %vm683_vm7 = vcmask 908288   ;;  %vm744_vm8 = vcmask 1043456  }
  0x17   : > { %373 = vrot.lane.b32.xlu1 %v367_v5, %s2797_s21  ;;  %409 = vrot.lane.b32.xlu0 %v367_v5, %s2798_s22  ;;  %v655_v30 = vpack.i.b16 %v654_v13, %v654_v13  ;;  %vm740_vm9 = vcmask 588800  }
  0x1b   : > { %489 = vrot.lane.b32.xlu1 %v367_v5, %s2799_s23  ;;  %487 = vrot.lane.b32.xlu0 %v368_v2, %s2799_s23 }
  0x1f   : > { %453 = vrot.lane.b32.xlu1 %v367_v5, %s2800_s24  ;;  %451 = vrot.lane.b32.xlu0 %v368_v2, %s2800_s24 }
  0x23   : > { %557 = vrot.lane.b32.xlu1 %v368_v2, %s2801_s25  ;;  %555 = vrot.lane.b32.xlu0 %v367_v5, %s2801_s25 }
  0x27   : > { %637 = vrot.lane.b32.xlu1 %v368_v2, %s2802_s26  ;;  %635 = vrot.lane.b32.xlu0 %v367_v5, %s2802_s26 }
  0x2b   : > { %601 = vrot.lane.b32.xlu1 %v368_v2, %s2803_s27  ;;  %599 = vrot.lane.b32.xlu0 %v367_v5, %s2803_s27 }
  0x2f   : > { %681 = vrot.lane.b32.xlu1 %v368_v2, %s3484_s28  ;;  %679 = vrot.lane.b32.xlu0 %v367_v5, %s3484_s28  ;;  %s3487_s28 = sshll.u32 %s3489_s14, 4 }
  0x30   : > { %s359_s19 = scalar_lea.vmem %s3482_s10, %s3487_s28 }
  0x33   : > { %727 = vperm.xlu0 %2682, %v365_v17   ;;  %732 = vperm.xlu1 %2683, %v366_v18   ;;  %v475_v18 = vrot.slane %v470_v55, %v2935_v39  ;;  %v2564_v55 = vcombine.high %v691_v41, %v691_v41 }
  0x85   : > { %v371_v44 = vpop.permute.xlu1 %370  ;;  %v408_v45 = vpop.permute.xlu0 %407 }
  0x89   : > { %v374_v57 = vpop.permute.xlu1 %373  ;;  %v410_v58 = vpop.permute.xlu0 %409 }
  0x8a   : > { %v376_v63 = vsel %vm375_vm0, %v374_v57, %v371_v44  ;;  %v381_v0 = vsel %vm375_vm0, %v371_v44, %v374_v57  ;;  %v412_v1 = vsel %vm411_vm1, %v410_v58, %v408_v45  ;;  %v417_v2 = vsel %vm411_vm1, %v408_v45, %v410_v58 }
  0x8b   : > { %v403_v3 = vmul.bf16 %v395_v49, %v381_v0  ;;  %v404_v4 = vmul.bf16 %v402_v50, %v376_v63  ;;  %v441_v5 = vmul.bf16 %v432_v51, %v417_v2  ;;  %v442_v6 = vmul.bf16 %v440_v52, %v412_v1 }
  0x8c   : > { %v660_v44 = vrot.slane %v655_v30, %v2958_v25  ;;  %v668_v45 = vrot.slane %v663_v31, %v2958_v25  ;;  %v618_v50 = vpack.i.b16 %v2559_v34, %v2559_v34  ;;  %v625_v51 = vpack.i.b16 %v2560_v35, %v2560_v35 }
  0x8d   : > { %405 = vst [vmem:[#allocation2] sm:$0xf] %v403_v3  ;;  %406 = vst [vmem:[#allocation2 + $0x8] sm:$0xf] %v404_v4  ;;  %v445_v8 = vrot.slane %v441_v5, 4  ;;  %v446_v9 = vrot.slane %v442_v6, 4  ;;  %v490_v11 = vpop.permute.xlu1 %489  ;;  %v488_v12 = vpop.permute.xlu0 %487  ;;  %v705_v3 = vpack.i.b16 %v2564_v55, %v2564_v55 }
  0x8e   : > { %v492_v15 = vsel %vm491_vm2, %v490_v11, %v488_v12  ;;  %v497_v17 = vsel %vm491_vm2, %v488_v12, %v490_v11  ;;  %v623_v62 = vrot.slane %v618_v50, %v2958_v25  ;;  %v630_v63 = vrot.slane %v625_v51, %v2958_v25  ;;  %v2723_v55 = vld [vmem:[%s3476_s4 + $0x4] ss:$8 sps:$4 sm:$0xff]  }
  0x8f   : > { %449 = vst [vmem:[#allocation2] sm:$0xf0] %v445_v8  ;;  %450 = vst [vmem:[#allocation2 + $0x8] sm:$0xf0] %v446_v9  ;;  %v521_v20 = vmul.bf16 %v512_v53, %v497_v17  ;;  %v522_v21 = vmul.bf16 %v520_v54, %v492_v15  ;;  %v2563_v54 = vcombine.low %v691_v41, %v691_v41  ;;  %2588 = vmatprep.mubr.msk.bf16.mxu1 %vm411_vm1, %v2723_v55 }
  0x91   : > { %v525_v26 = vrot.slane %v521_v20, 4  ;;  %v526_v27 = vrot.slane %v522_v21, 4  ;;  %v454_v28 = vpop.permute.xlu1 %453  ;;  %v452_v29 = vpop.permute.xlu0 %451  ;;  %v698_v2 = vpack.i.b16 %v2563_v54, %v2563_v54 }
  0x92   : > { %v456_v32 = vsel %vm455_vm3, %v454_v28, %v452_v29  ;;  %v461_v33 = vsel %vm455_vm3, %v452_v29, %v454_v28 }
  0x93   : > { %529 = vst [vmem:[#allocation2 + $0x10] sm:$0xf0] %v525_v26  ;;  %530 = vst [vmem:[#allocation2 + $0x18] sm:$0xf0] %v526_v27  ;;  %v483_v37 = vmul.bf16 %v475_v18, %v461_v33  ;;  %v484_v38 = vmul.bf16 %v482_v19, %v456_v32  ;;  %v703_v17 = vrot.slane %v698_v2, %v2932_v36  ;;  %v2702_v33 = vld [vmem:[%s3474_s2] sm:$0xff]  }
  0x94   : > { %v710_v18 = vrot.slane %v705_v3, %v2932_v36 }
  0x95   : > { %485 = vst [vmem:[#allocation2 + $0x10] sm:$0xf] %v483_v37  ;;  %486 = vst [vmem:[#allocation2 + $0x18] sm:$0xf] %v484_v38  ;;  %v558_v42 = vpop.permute.xlu1 %557  ;;  %v556_v43 = vpop.permute.xlu0 %555 }
  0x96   : > { %v560_v46 = vsel %vm559_vm4, %v556_v43, %v558_v42  ;;  %v565_v47 = vsel %vm559_vm4, %v558_v42, %v556_v43  ;;  %v716_v48 = vld [vmem:[#allocation2 + $0x8] sm:$0xff]  ;;  %v715_v49 = vld [vmem:[#allocation2] sm:$0xff] }
  0x97   : > { %v589_v52 = vmul.bf16 %v580_v40, %v560_v46  ;;  %v590_v53 = vmul.bf16 %v588_v7, %v565_v47  ;;  %751 = vmatprep.subr.bf16.mxu0 %v716_v48 }
  0x98   : > { %752 = vmatpush1.bf16.msra.mxu0 %v715_v49 }
  0x99   : > { %v593_v56 = vrot.slane %v589_v52, 4  ;;  %v594_v57 = vrot.slane %v590_v53, 4  ;;  %v638_v58 = vpop.permute.xlu1 %637  ;;  %v636_v59 = vpop.permute.xlu0 %635 }
  0x9a   : > { %v640_v60 = vsel %vm639_vm5, %v636_v59, %v638_v58  ;;  %v645_v61 = vsel %vm639_vm5, %v638_v58, %v636_v59  ;;  %v858_v58 = vld [vmem:[%s3473_s1] sm:$0x11] }
  0x9b   : > { %597 = vst [vmem:[#allocation2 + $0x20] sm:$0xf0] %v593_v56  ;;  %598 = vst [vmem:[#allocation2 + $0x28] sm:$0xf0] %v594_v57  ;;  %v669_v0 = vmul.bf16 %v660_v44, %v640_v60  ;;  %v670_v1 = vmul.bf16 %v668_v45, %v645_v61  ;;  %v809_v56 = vld [vmem:[%s3477_s5 + $0x8] sm:$0xff]  ;;  %v808_v57 = vld [vmem:[%s3477_s5] sm:$0xff]  ;;  %v2570_v60 = vcombine.low %v858_v58, %v858_v58 }
  0x9c   : > { %v718_v4 = vld [vmem:[#allocation2 + $0x18] sm:$0xff]  ;;  %v717_v5 = vld [vmem:[#allocation2 + $0x10] sm:$0xff]  ;;  %v824_v59 = vld [vmem:[%s3473_s1] sm:$0x11]  ;;  %v2571_v61 = vcombine.high %v858_v58, %v858_v58 }
  0x9d   : > { %v673_v6 = vrot.slane %v669_v0, 4  ;;  %v674_v8 = vrot.slane %v670_v1, 4  ;;  %v602_v9 = vpop.permute.xlu1 %601  ;;  %753 = vmatprep.subr.bf16.mxu0 %v718_v4  ;;  %v600_v11 = vpop.permute.xlu0 %599  ;;  %v865_v0 = vshrl.u32 %v2570_v60, 16  ;;  %v894_v4 = vld [vmem:[%s3473_s1] sm:$0x22] }
  0x9e   : > { %v604_v12 = vsel %vm603_vm6, %v600_v11, %v602_v9  ;;  %v609_v13 = vsel %vm603_vm6, %v602_v9, %v600_v11  ;;  %754 = vmatpush1.bf16.msra.mxu0 %v717_v5  ;;  %v873_v1 = vshrl.u32 %v2571_v61, 16  ;;  %v928_v5 = vld [vmem:[%s3473_s1] sm:$0x22]  ;;  %v2572_v9 = vcombine.low %v894_v4, %v894_v4  ;;  %v1058_v60 = vld [vmem:[%s3473_s1] sm:$0x88] }
  0x9f   : > { %677 = vst [vmem:[#allocation2 + $0x30] sm:$0xf0] %v673_v6  ;;  %678 = vst [vmem:[#allocation2 + $0x38] sm:$0xf0] %v674_v8  ;;  %v631_v14 = vmul.bf16 %v623_v62, %v604_v12  ;;  %v632_v15 = vmul.bf16 %v630_v63, %v609_v13  ;;  %v2568_v62 = vcombine.low %v824_v59, %v824_v59 }
  0xa0   : > { %v2569_v63 = vcombine.high %v824_v59, %v824_v59  ;;  %v866_v6 = vpack.i.b16 %v865_v0, %v865_v0  ;;  %v874_v8 = vpack.i.b16 %v873_v1, %v873_v1  ;;  %v2573_v11 = vcombine.high %v894_v4, %v894_v4 }
  0xa1   : > { %633 = vst [vmem:[#allocation2 + $0x30] sm:$0xf] %v631_v14  ;;  %634 = vst [vmem:[#allocation2 + $0x38] sm:$0xf] %v632_v15  ;;  %v682_v19 = vpop.permute.xlu1 %681  ;;  %v680_v20 = vpop.permute.xlu0 %679  ;;  %v831_v2 = vpack.i.b16 %v2568_v62, %v2568_v62  ;;  %v2574_v14 = vcombine.low %v928_v5, %v928_v5  ;;  %v2575_v15 = vcombine.high %v928_v5, %v928_v5 }
  0xa2   : > { %v684_v21 = vsel %vm683_vm7, %v680_v20, %v682_v19  ;;  %v689_v22 = vsel %vm683_vm7, %v682_v19, %v680_v20  ;;  %v720_v23 = vld [vmem:[#allocation2 + $0x28] sm:$0xff]  ;;  %v719_v24 = vld [vmem:[#allocation2 + $0x20] sm:$0xff]  ;;  %v838_v3 = vpack.i.b16 %v2569_v63, %v2569_v63  ;;  %v871_v19 = vrot.slane %v866_v6, %v2932_v36 }
  0xa3   : > { %v711_v26 = vmul.bf16 %v703_v17, %v684_v21  ;;  %v712_v27 = vmul.bf16 %v710_v18, %v689_v22  ;;  %755 = vmatprep.subr.bf16.mxu0 %v720_v23  ;;  %v836_v12 = vrot.slane %v831_v2, %v2932_v36  ;;  %v879_v20 = vrot.slane %v874_v8, %v2932_v36 }
  0xa4   : > { %756 = vmatpush1.bf16.msra.mxu0 %v719_v24  ;;  %v843_v13 = vrot.slane %v838_v3, %v2932_v36  ;;  %v901_v23 = vpack.i.b16 %v2572_v9, %v2572_v9  ;;  %v908_v24 = vpack.i.b16 %v2573_v11, %v2573_v11  ;;  %v2583_v8 = vcombine.high %v1058_v60, %v1058_v60 }
  0xa5   : > { %713 = vst [vmem:[#allocation2 + $0x40] sm:$0xf] %v711_v26  ;;  %714 = vst [vmem:[#allocation2 + $0x48] sm:$0xf] %v712_v27  ;;  %v988_v26 = vld [vmem:[%s3473_s1] sm:$0x44] }
  0xa6   : > { %v954_v27 = vld [vmem:[%s3473_s1] sm:$0x44] }
  0xa8   : > { %v722_v28 = vld [vmem:[#allocation2 + $0x38] sm:$0xff]  ;;  %v721_v29 = vld [vmem:[#allocation2 + $0x30] sm:$0xff] }
  0xa9   : > { %757 = vmatprep.subr.bf16.mxu0 %v722_v28 }
  0xaa   : > { %758 = vmatpush1.bf16.msra.mxu0 %v721_v29 }
  0xac   : > { %v724_v30 = vld [vmem:[#allocation2 + $0x48] sm:$0xf]  ;;  %v723_v31 = vld [vmem:[#allocation2 + $0x40] sm:$0xf] }
  0xad   : > { %2566 = vmatprep.subr.msk.bf16.mxu0 %vm744_vm8, %v724_v30  ;;  %v746_v32 = vsel %vm744_vm8, %v723_v31, 0  ;;  %v935_v30 = vshrl.u32 %v2574_v14, 16  ;;  %v943_v31 = vshrl.u32 %v2575_v15, 16 }
  0xae   : > { %760 = vmatpush1.bf16.msra.mxu0 %v746_v32 }
  0xb1   : > { %2567 = vmatmul.mubr.msk.bf16.vlgmr.msra.gmra.mrb[0].mxu0 %vm740_vm9, %v2702_v33 }
  0xb2   : > { %v728_v34 = vpop.permute.xlu0 %727  ;;  %v733_v37 = vpop.permute.xlu1 %732 }
 0x184   : > { %v785_v35 = vpop.f32.mrb[0].mxu0 }
 0x185   : > { %v786_v38 = vadd.f32 %v785_v35, %v728_v34  ;;  %v787_v40 = vpop.f32.mrb[1].mxu0  ;;  %v2577_v35 = vcombine.high %v954_v27, %v954_v27 }
 0x186   : > { %v788_v7 = vadd.f32 %v787_v40, %v728_v34  ;;  %v789_v41 = vpop.f32.mrb[2].mxu0  ;;  %v2579_v34 = vcombine.high %v988_v26, %v988_v26 }
 0x187   : > { %v798_v42 = vmul.f32 0.01, %v786_v38  ;;  %v790_v43 = vadd.f32 %v789_v41, %v733_v37  ;;  %v791_v44 = vpop.f32.mrb[3].mxu0  ;;  %vm794_vm10 = vcmp.ge.f32.partialorder %v786_v38, 0.0  ;;  %v913_v41 = vrot.slane %v908_v24, %v2935_v39 }
 0x188   : > { %v799_v45 = vmul.f32 0.01, %v788_v7  ;;  %v792_v46 = vadd.f32 %v791_v44, %v733_v37  ;;  %vm795_vm11 = vcmp.ge.f32.partialorder %v788_v7, 0.0  ;;  %v2576_v37 = vcombine.low %v954_v27, %v954_v27 }
 0x189   : > { %vm796_vm12 = vcmp.ge.f32.partialorder %v790_v43, 0.0  ;;  %v800_v47 = vmul.f32 0.01, %v790_v43  ;;  %v2984_v49 = vsel %vm794_vm10, %v786_v38, %v798_v42  ;;  %v936_v44 = vpack.i.b16 %v935_v30, %v935_v30 }
 0x18a   : > { %vm797_vm13 = vcmp.ge.f32.partialorder %v792_v46, 0.0  ;;  %v801_v48 = vmul.f32 0.01, %v792_v46  ;;  %v2988_v51 = vsel %vm795_vm11, %v788_v7, %v799_v45  ;;  %v906_v7 = vrot.slane %v901_v23, %v2935_v39 }
 0x18b   : > { %v2986_v50 = vsel %vm796_vm12, %v790_v43, %v800_v47  ;;  %v944_v45 = vpack.i.b16 %v943_v31, %v943_v31  ;;  %v2578_v47 = vcombine.low %v988_v26, %v988_v26  ;;  %v1003_v55 = vshrl.u32 %v2579_v34, 16 }
 0x18c   : > { %v2992_v52 = vpack.c.bf16 %v2986_v50, %v2984_v49  ;;  %v2994_v53 = vsel %vm797_vm13, %v792_v46, %v801_v48  ;;  %v961_v61 = vpack.i.b16 %v2576_v37, %v2576_v37  ;;  %v941_v0 = vrot.slane %v936_v44, %v2935_v39 }
 0x18d   : > { %v2998_v54 = vpack.c.bf16 %v2994_v53, %v2988_v51  ;;  %v949_v1 = vrot.slane %v944_v45, %v2935_v39  ;;  %v995_v3 = vshrl.u32 %v2578_v47, 16  ;;  %v1004_v6 = vpack.i.b16 %v1003_v55, %v1003_v55 }
 0x18e   : > { %816 = vrot.lane.b32.xlu0 %v2992_v52, %s2797_s21  ;;  %v966_v15 = vrot.slane %v961_v61, %v2891_v10  ;;  %v1073_v24 = vshrl.u32 %v2583_v8, 16  ;;  %v2721_v8 = vld [vmem:[%s3476_s4] ss:$8 sps:$4 sm:$0xff]  }
 0x18f   : > { %813 = vrot.lane.b32.xlu1 %v2998_v54, %s2797_s21 }
 0x192   : > { %850 = vrot.lane.b32.xlu0 %v2992_v52, %s2798_s22 }
 0x193   : > { %848 = vrot.lane.b32.xlu1 %v2998_v54, %s2798_s22 }
 0x196   : > { %886 = vrot.lane.b32.xlu0 %v2992_v52, %s2800_s24 }
 0x197   : > { %884 = vrot.lane.b32.xlu1 %v2998_v54, %s2800_s24 }
 0x19a   : > { %920 = vrot.lane.b32.xlu0 %v2992_v52, %s2799_s23 }
 0x19b   : > { %918 = vrot.lane.b32.xlu1 %v2998_v54, %s2799_s23 }
 0x19e   : > { %980 = vrot.lane.b32.xlu0 %v2998_v54, %s2801_s25 }
 0x19f   : > { %978 = vrot.lane.b32.xlu1 %v2992_v52, %s2801_s25 }
 0x1a2   : > { %1016 = vrot.lane.b32.xlu0 %v2998_v54, %s2803_s27 }
 0x1a3   : > { %1014 = vrot.lane.b32.xlu1 %v2992_v52, %s2803_s27 }
 0x1a6   : > { %1050 = vrot.lane.b32.xlu0 %v2998_v54, %s2802_s26 }
 0x1a7   : > { %1048 = vrot.lane.b32.xlu1 %v2992_v52, %s2802_s26 }
 0x1aa   : > { %1086 = vrot.lane.b32.xlu0 %v2998_v54, %s3486_s15 }
 0x1ab   : > { %1084 = vrot.lane.b32.xlu1 %v2992_v52, %s3486_s15 }
 0x1ae   : > { %1143 = vperm.xlu0 %2682, %v809_v56   ;;  %v1024_v56 = vld [vmem:[%s3473_s1] sm:$0x88] }
 0x1af   : > { %1138 = vperm.xlu1 %2683, %v808_v57   ;;  %v968_v57 = vpack.i.b16 %v2577_v35, %v2577_v35  ;;  %v2581_v4 = vcombine.high %v1024_v56, %v1024_v56 }
 0x1b1   : > { %v973_v9 = vrot.slane %v968_v57, %v2891_v10 }
 0x1b3   : > { %v975_v26 = vmul.bf16 %v973_v9, %v2998_v54 }
 0x200   : > { %v817_v17 = vpop.permute.xlu0 %816 }
 0x201   : > { %v814_v18 = vpop.permute.xlu1 %813 }
 0x202   : > { %v818_v21 = vsel %vm375_vm0, %v817_v17, %v814_v18  ;;  %v822_v22 = vsel %vm375_vm0, %v814_v18, %v817_v17  ;;  %v996_v18 = vpack.i.b16 %v995_v3, %v995_v3 }
 0x203   : > { %v844_v28 = vmul.bf16 %v836_v12, %v822_v22  ;;  %v845_v29 = vmul.bf16 %v843_v13, %v818_v21  ;;  %v2582_v21 = vcombine.low %v1058_v60, %v1058_v60  ;;  %v1009_v22 = vrot.slane %v1004_v6, %v2891_v10 }
 0x204   : > { %v851_v32 = vpop.permute.xlu0 %850  ;;  %v1001_v30 = vrot.slane %v996_v18, %v2891_v10 }
 0x205   : > { %v849_v33 = vpop.permute.xlu1 %848  ;;  %1158 = vmatprep.subr.bf16.mxu1 %v845_v29  ;;  %v974_v29 = vmul.bf16 %v966_v15, %v2992_v52  ;;  %v1065_v34 = vshrl.u32 %v2582_v21, 16 }
 0x206   : > { %v852_v38 = vsel %vm411_vm1, %v851_v32, %v849_v33  ;;  %v856_v40 = vsel %vm411_vm1, %v849_v33, %v851_v32  ;;  %1159 = vmatpush1.bf16.msra.mxu1 %v844_v28  ;;  %v1094_v28 = vld [vmem:[%s3473_s1 + $0x8] sm:$0x11] }
 0x207   : > { %v880_v42 = vmul.bf16 %v871_v19, %v856_v40  ;;  %v881_v43 = vmul.bf16 %v879_v20, %v852_v38  ;;  %v2580_v19 = vcombine.low %v1024_v56, %v1024_v56  ;;  %v1038_v20 = vpack.i.b16 %v2581_v4, %v2581_v4 }
 0x208   : > { %v887_v46 = vpop.permute.xlu0 %886  ;;  %v1074_v38 = vpack.i.b16 %v1073_v24, %v1073_v24  ;;  %v2585_v40 = vcombine.high %v1094_v28, %v1094_v28  ;;  %v2584_v44 = vcombine.low %v1094_v28, %v1094_v28 }
 0x209   : > { %v885_v48 = vpop.permute.xlu1 %884  ;;  %1160 = vmatprep.subr.bf16.mxu1 %v881_v43  ;;  %v1031_v32 = vpack.i.b16 %v2580_v19, %v2580_v19  ;;  %v1043_v33 = vrot.slane %v1038_v20, %v2958_v25  ;;  %v1066_v43 = vpack.i.b16 %v1065_v34, %v1065_v34  ;;  %v1215_v34 = vld [vmem:[%s3479_s7] sm:$0xff] }
 0x20a   : > { %v888_v58 = vsel %vm455_vm3, %v887_v46, %v885_v48  ;;  %v892_v59 = vsel %vm455_vm3, %v885_v48, %v887_v46  ;;  %1161 = vmatpush1.bf16.msra.mxu1 %v880_v42  ;;  %v1079_v47 = vrot.slane %v1074_v38, %v2958_v25  ;;  %v1108_v55 = vpack.i.b16 %v2585_v40, %v2585_v40 }
 0x20b   : > { %v914_v62 = vmul.bf16 %v906_v7, %v892_v59  ;;  %v915_v63 = vmul.bf16 %v913_v41, %v888_v58  ;;  %v1036_v52 = vrot.slane %v1031_v32, %v2958_v25  ;;  %v1071_v58 = vrot.slane %v1066_v43, %v2958_v25  ;;  %v2742_v32 = vld [vmem:[%s3478_s6 + $0x4] ss:$8 sps:$4 sm:$0xff]  }
 0x20c   : > { %v921_v2 = vpop.permute.xlu0 %920  ;;  %v1101_v60 = vpack.i.b16 %v2584_v44, %v2584_v44  ;;  %2609 = vmatprep.mubr.msk.bf16.mxu0 %vm411_vm1, %v2742_v32  ;;  %v1301_v44 = vld [vmem:[%s3473_s1] sm:$0x22] }
 0x20d   : > { %v919_v5 = vpop.permute.xlu1 %918  ;;  %1162 = vmatprep.subr.bf16.mxu1 %v915_v63  ;;  %v1113_v63 = vrot.slane %v1108_v55, %v2932_v36  ;;  %v2594_v55 = vcombine.high %v1301_v44, %v1301_v44 }
 0x20e   : > { %v922_v11 = vsel %vm491_vm2, %v921_v2, %v919_v5  ;;  %v926_v12 = vsel %vm491_vm2, %v919_v5, %v921_v2  ;;  %1163 = vmatpush1.bf16.msra.mxu1 %v914_v62  ;;  %v1106_v3 = vrot.slane %v1101_v60, %v2932_v36 }
 0x20f   : > { %v950_v13 = vmul.bf16 %v941_v0, %v926_v12  ;;  %v951_v14 = vmul.bf16 %v949_v1, %v922_v11 }
 0x210   : > { %v981_v17 = vpop.permute.xlu0 %980 }
 0x211   : > { %v979_v23 = vpop.permute.xlu1 %978  ;;  %1164 = vmatprep.subr.bf16.mxu1 %v951_v14 }
 0x212   : > { %v986_v27 = vsel %vm559_vm4, %v981_v17, %v979_v23  ;;  %1165 = vmatpush1.bf16.msra.mxu1 %v950_v13  ;;  %v982_v35 = vsel %vm559_vm4, %v979_v23, %v981_v17 }
 0x213   : > { %1166 = vmatprep.subr.bf16.mxu1 %v975_v26  ;;  %v1011_v54 = vmul.bf16 %v1009_v22, %v986_v27  ;;  %v1010_v41 = vmul.bf16 %v1001_v30, %v982_v35  ;;  %v1265_v35 = vld [vmem:[%s3473_s1] sm:$0x11] }
 0x214   : > { %v1017_v31 = vpop.permute.xlu0 %1016  ;;  %v2592_v38 = vcombine.high %v1265_v35, %v1265_v35 }
 0x215   : > { %v1015_v37 = vpop.permute.xlu1 %1014 }
 0x216   : > { %v1022_v7 = vsel %vm603_vm6, %v1017_v31, %v1015_v37  ;;  %1167 = vmatpush1.bf16.msra.mxu1 %v974_v29  ;;  %v1018_v45 = vsel %vm603_vm6, %v1015_v37, %v1017_v31  ;;  %v2591_v37 = vcombine.low %v1265_v35, %v1265_v35 }
 0x217   : > { %1168 = vmatprep.subr.bf16.mxu1 %v1011_v54  ;;  %v1045_v46 = vmul.bf16 %v1043_v33, %v1022_v7  ;;  %v1044_v57 = vmul.bf16 %v1036_v52, %v1018_v45  ;;  %v1216_v33 = vld [vmem:[%s3479_s7 + $0x8] sm:$0xff]  ;;  %v1231_v54 = vld [vmem:[%s3473_s1] sm:$0x11]  ;;  %v1280_v52 = vshrl.u32 %v2592_v38, 16  ;;  %v1335_v45 = vld [vmem:[%s3473_s1] sm:$0x22] }
 0x218   : > { %v1051_v42 = vpop.permute.xlu0 %1050  ;;  %v2589_v40 = vcombine.low %v1231_v54, %v1231_v54  ;;  %v2590_v7 = vcombine.high %v1231_v54, %v1231_v54 }
 0x219   : > { %v1049_v48 = vpop.permute.xlu1 %1048 }
 0x21a   : > { %v1056_v56 = vsel %vm639_vm5, %v1051_v42, %v1049_v48  ;;  %1169 = vmatpush1.bf16.msra.mxu1 %v1010_v41  ;;  %v1052_v61 = vsel %vm639_vm5, %v1049_v48, %v1051_v42  ;;  %v1272_v41 = vshrl.u32 %v2591_v37, 16  ;;  %v1238_v42 = vpack.i.b16 %v2589_v40, %v2589_v40  ;;  %v1465_v37 = vld [vmem:[%s3473_s1] sm:$0x88] }
 0x21b   : > { %1170 = vmatprep.subr.bf16.mxu1 %v1045_v46  ;;  %v1081_v62 = vmul.bf16 %v1079_v47, %v1056_v56  ;;  %v1080_v2 = vmul.bf16 %v1071_v58, %v1052_v61  ;;  %v1245_v43 = vpack.i.b16 %v2590_v7, %v2590_v7  ;;  %v1281_v47 = vpack.i.b16 %v1280_v52, %v1280_v52 }
 0x21c   : > { %v1087_v59 = vpop.permute.xlu0 %1086  ;;  %v1273_v46 = vpack.i.b16 %v1272_v41, %v1272_v41  ;;  %v2593_v48 = vcombine.low %v1301_v44, %v1301_v44  ;;  %v1243_v56 = vrot.slane %v1238_v42, %v2932_v36  ;;  %v2595_v58 = vcombine.low %v1335_v45, %v1335_v45 }
 0x21d   : > { %v1085_v0 = vpop.permute.xlu1 %1084 }
 0x21e   : > { %v1092_v1 = vsel %vm683_vm7, %v1087_v59, %v1085_v0  ;;  %1171 = vmatpush1.bf16.msra.mxu1 %v1044_v57  ;;  %v1088_v4 = vsel %vm683_vm7, %v1085_v0, %v1087_v59  ;;  %v1250_v57 = vrot.slane %v1245_v43, %v2932_v36  ;;  %v2596_v59 = vcombine.high %v1335_v45, %v1335_v45 }
 0x21f   : > { %1172 = vmatprep.subr.bf16.mxu1 %v1081_v62  ;;  %v1115_v5 = vmul.bf16 %v1113_v63, %v1092_v1  ;;  %v1114_v6 = vmul.bf16 %v1106_v3, %v1088_v4  ;;  %v1278_v62 = vrot.slane %v1273_v46, %v2932_v36  ;;  %v1286_v63 = vrot.slane %v1281_v47, %v2932_v36  ;;  %v1395_v4 = vld [vmem:[%s3473_s1] sm:$0x44] }
 0x220   : > { %v1315_v3 = vpack.i.b16 %v2594_v55, %v2594_v55  ;;  %v2604_v47 = vcombine.high %v1465_v37, %v1465_v37 }
 0x222   : > { %1173 = vmatpush1.bf16.msra.mxu1 %v1080_v2  ;;  %v1308_v2 = vpack.i.b16 %v2593_v48, %v2593_v48 }
 0x223   : > { %1174 = vmatprep.subr.bf16.mxu1 %v1115_v5  ;;  %v1361_v5 = vld [vmem:[%s3473_s1] sm:$0x44] }
 0x226   : > { %1175 = vmatpush1.bf16.msra.mxu1 %v1114_v6 }
 0x229   : > { %1191 = vmatmul.mubr.bf16.vlgmr.msra.gmra.mrb[0].mxu1 %v2721_v8 }
 0x22d   : > { %v1144_v14 = vpop.permute.xlu0 %1143 }
 0x22e   : > { %v1139_v9 = vpop.permute.xlu1 %1138 }
 0x2fc   : > { %v1192_v11 = vpop.f32.mrb[0].mxu1 }
 0x2fd   : > { %v1193_v12 = vadd.f32 %v1192_v11, %v1139_v9  ;;  %v1194_v13 = vpop.f32.mrb[1].mxu1  ;;  %v1350_v11 = vshrl.u32 %v2596_v59, 16 }
 0x2fe   : > { %v1195_v15 = vadd.f32 %v1194_v13, %v1139_v9  ;;  %v1196_v17 = vpop.f32.mrb[2].mxu1  ;;  %v1342_v9 = vshrl.u32 %v2595_v58, 16 }
 0x2ff   : > { %v1205_v18 = vmul.f32 0.01, %v1193_v12  ;;  %v1197_v19 = vadd.f32 %v1196_v17, %v1144_v14  ;;  %v1198_v20 = vpop.f32.mrb[3].mxu1  ;;  %vm1201_vm14 = vcmp.ge.f32.partialorder %v1193_v12, 0.0  ;;  %v2597_v17 = vcombine.low %v1361_v5, %v1361_v5 }
 0x300   : > { %v1206_v21 = vmul.f32 0.01, %v1195_v15  ;;  %v1199_v22 = vadd.f32 %v1198_v20, %v1144_v14  ;;  %vm1202_vm15 = vcmp.ge.f32.partialorder %v1195_v15, 0.0  ;;  %v2600_v14 = vcombine.high %v1395_v4, %v1395_v4 }
 0x301   : > { %vm1203_vm8 = vcmp.ge.f32.partialorder %v1197_v19, 0.0  ;;  %v1207_v23 = vmul.f32 0.01, %v1197_v19  ;;  %v1209_v26 = vsel %vm1201_vm14, %v1193_v12, %v1205_v18  ;;  %v1313_v20 = vrot.slane %v1308_v2, %v2935_v39 }
 0x302   : > { %vm1204_vm9 = vcmp.ge.f32.partialorder %v1199_v22, 0.0  ;;  %v1208_v24 = vmul.f32 0.01, %v1199_v22  ;;  %v1210_v28 = vsel %vm1202_vm15, %v1195_v15, %v1206_v21  ;;  %v2598_v15 = vcombine.high %v1361_v5, %v1361_v5 }
 0x303   : > { %v1211_v27 = vsel %vm1203_vm8, %v1197_v19, %v1207_v23  ;;  %v1320_v21 = vrot.slane %v1315_v3, %v2935_v39  ;;  %v1410_v32 = vshrl.u32 %v2600_v14, 16  ;;  %v1368_v38 = vpack.i.b16 %v2597_v17, %v2597_v17 }
 0x304   : > { %v3108_v29 = vpack.c.bf16 %v1211_v27, %v1209_v26  ;;  %v1212_v30 = vsel %vm1204_vm9, %v1199_v22, %v1208_v24  ;;  %v1343_v24 = vpack.i.b16 %v1342_v9, %v1342_v9  ;;  %v1351_v26 = vpack.i.b16 %v1350_v11, %v1350_v11 }
 0x305   : > { %v3110_v31 = vpack.c.bf16 %v1212_v30, %v1210_v28  ;;  %v2599_v28 = vcombine.low %v1395_v4, %v1395_v4  ;;  %v1411_v46 = vpack.i.b16 %v1410_v32, %v1410_v32  ;;  %v1373_v59 = vrot.slane %v1368_v38, %v2891_v10 }
 0x306   : > { %1223 = vrot.lane.b32.xlu0 %v3108_v29, %s2797_s21  ;;  %v1348_v41 = vrot.slane %v1343_v24, %v2935_v39  ;;  %v1356_v52 = vrot.slane %v1351_v26, %v2935_v39  ;;  %v1480_v3 = vshrl.u32 %v2604_v47, 16  ;;  %v2744_v47 = vld [vmem:[%s3478_s6] ss:$8 sps:$4 sm:$0xff]  }
 0x307   : > { %1220 = vrot.lane.b32.xlu1 %v3110_v31, %s2797_s21  ;;  %v1402_v43 = vshrl.u32 %v2599_v28, 16 }
 0x30a   : > { %1257 = vrot.lane.b32.xlu0 %v3108_v29, %s2798_s22 }
 0x30b   : > { %1255 = vrot.lane.b32.xlu1 %v3110_v31, %s2798_s22 }
 0x30e   : > { %1293 = vrot.lane.b32.xlu0 %v3108_v29, %s2800_s24 }
 0x30f   : > { %1291 = vrot.lane.b32.xlu1 %v3110_v31, %s2800_s24 }
 0x312   : > { %1327 = vrot.lane.b32.xlu0 %v3108_v29, %s2799_s23 }
 0x313   : > { %1325 = vrot.lane.b32.xlu1 %v3110_v31, %s2799_s23 }
 0x316   : > { %1387 = vrot.lane.b32.xlu0 %v3110_v31, %s2801_s25 }
 0x317   : > { %1385 = vrot.lane.b32.xlu1 %v3108_v29, %s2801_s25 }
 0x31a   : > { %1423 = vrot.lane.b32.xlu0 %v3110_v31, %s2803_s27 }
 0x31b   : > { %1421 = vrot.lane.b32.xlu1 %v3108_v29, %s2803_s27 }
 0x31e   : > { %1457 = vrot.lane.b32.xlu0 %v3110_v31, %s2802_s26 }
 0x31f   : > { %1455 = vrot.lane.b32.xlu1 %v3108_v29, %s2802_s26 }
 0x322   : > { %1493 = vrot.lane.b32.xlu0 %v3110_v31, %s3486_s15 }
 0x323   : > { %1491 = vrot.lane.b32.xlu1 %v3108_v29, %s3486_s15 }
 0x326   : > { %1550 = vperm.xlu0 %2682, %v1216_v33   ;;  %v1431_v33 = vld [vmem:[%s3473_s1] sm:$0x88] }
 0x327   : > { %1545 = vperm.xlu1 %2683, %v1215_v34   ;;  %v1375_v34 = vpack.i.b16 %v2598_v15, %v2598_v15  ;;  %v2602_v44 = vcombine.high %v1431_v33, %v1431_v33 }
 0x329   : > { %v1380_v48 = vrot.slane %v1375_v34, %v2891_v10 }
 0x32b   : > { %v1382_v4 = vmul.bf16 %v1380_v48, %v3110_v31 }
 0x378   : > { %v1224_v60 = vpop.permute.xlu0 %1223 }
 0x379   : > { %v1221_v61 = vpop.permute.xlu1 %1220 }
 0x37a   : > { %v1225_v0 = vsel %vm375_vm0, %v1224_v60, %v1221_v61  ;;  %v1229_v1 = vsel %vm375_vm0, %v1221_v61, %v1224_v60  ;;  %v1403_v61 = vpack.i.b16 %v1402_v43, %v1402_v43 }
 0x37b   : > { %v1251_v6 = vmul.bf16 %v1243_v56, %v1229_v1  ;;  %v1252_v8 = vmul.bf16 %v1250_v57, %v1225_v0  ;;  %v2603_v0 = vcombine.low %v1465_v37, %v1465_v37  ;;  %v1416_v1 = vrot.slane %v1411_v46, %v2891_v10 }
 0x37c   : > { %v1258_v12 = vpop.permute.xlu0 %1257  ;;  %v1408_v9 = vrot.slane %v1403_v61, %v2891_v10 }
 0x37d   : > { %v1256_v13 = vpop.permute.xlu1 %1255  ;;  %1565 = vmatprep.subr.bf16.mxu0 %v1252_v8  ;;  %v1381_v8 = vmul.bf16 %v1373_v59, %v3108_v29  ;;  %v1472_v14 = vshrl.u32 %v2603_v0, 16 }
 0x37e   : > { %v1259_v18 = vsel %vm411_vm1, %v1258_v12, %v1256_v13  ;;  %v1263_v19 = vsel %vm411_vm1, %v1256_v13, %v1258_v12  ;;  %1566 = vmatpush1.bf16.msra.mxu0 %v1251_v6  ;;  %v1501_v6 = vld [vmem:[%s3473_s1 + $0x8] sm:$0x11] }
 0x37f   : > { %v1287_v22 = vmul.bf16 %v1278_v62, %v1263_v19  ;;  %v1288_v23 = vmul.bf16 %v1286_v63, %v1259_v18  ;;  %v2601_v62 = vcombine.low %v1431_v33, %v1431_v33  ;;  %v1445_v63 = vpack.i.b16 %v2602_v44, %v2602_v44 }
 0x380   : > { %v1294_v27 = vpop.permute.xlu0 %1293  ;;  %v1481_v18 = vpack.i.b16 %v1480_v3, %v1480_v3  ;;  %v2606_v19 = vcombine.high %v1501_v6, %v1501_v6  ;;  %v2605_v24 = vcombine.low %v1501_v6, %v1501_v6  ;;  %v2763_v6 = vld [vmem:[%s3476_s4 + $0x14] ss:$8 sps:$4 sm:$0xff]  }
 0x381   : > { %v1292_v30 = vpop.permute.xlu1 %1291  ;;  %1567 = vmatprep.subr.bf16.mxu0 %v1288_v23  ;;  %v1438_v12 = vpack.i.b16 %v2601_v62, %v2601_v62  ;;  %v1450_v13 = vrot.slane %v1445_v63, %v2958_v25  ;;  %v1473_v23 = vpack.i.b16 %v1472_v14, %v1472_v14  ;;  %2634 = vmatprep.mubr.msk.bf16.mxu1 %vm411_vm1, %v2763_v6 }
 0x382   : > { %v1295_v35 = vsel %vm455_vm3, %v1294_v27, %v1292_v30  ;;  %v1299_v54 = vsel %vm455_vm3, %v1292_v30, %v1294_v27  ;;  %1568 = vmatpush1.bf16.msra.mxu0 %v1287_v22  ;;  %v1486_v28 = vrot.slane %v1481_v18, %v2958_v25  ;;  %v1515_v32 = vpack.i.b16 %v2606_v19, %v2606_v19 }
 0x383   : > { %v1321_v40 = vmul.bf16 %v1313_v20, %v1299_v54  ;;  %v1322_v7 = vmul.bf16 %v1320_v21, %v1295_v35  ;;  %v1443_v29 = vrot.slane %v1438_v12, %v2958_v25  ;;  %v1478_v35 = vrot.slane %v1473_v23, %v2958_v25  ;;  %v1632_v12 = vld [vmem:[%s3473_s1] sm:$0x11] }
 0x384   : > { %v1328_v42 = vpop.permute.xlu0 %1327  ;;  %v1508_v37 = vpack.i.b16 %v2605_v24, %v2605_v24 }
 0x385   : > { %v1326_v45 = vpop.permute.xlu1 %1325  ;;  %1569 = vmatprep.subr.bf16.mxu0 %v1322_v7  ;;  %v1520_v7 = vrot.slane %v1515_v32, %v2932_v36 }
 0x386   : > { %v1329_v55 = vsel %vm491_vm2, %v1328_v42, %v1326_v45  ;;  %v1333_v56 = vsel %vm491_vm2, %v1326_v45, %v1328_v42  ;;  %1570 = vmatpush1.bf16.msra.mxu0 %v1321_v40  ;;  %v1513_v43 = vrot.slane %v1508_v37, %v2932_v36 }
 0x387   : > { %v1357_v57 = vmul.bf16 %v1348_v41, %v1333_v56  ;;  %v1358_v58 = vmul.bf16 %v1356_v52, %v1329_v55 }
 0x388   : > { %v1388_v60 = vpop.permute.xlu0 %1387 }
 0x389   : > { %v1386_v2 = vpop.permute.xlu1 %1385  ;;  %1571 = vmatprep.subr.bf16.mxu0 %v1358_v58 }
 0x38a   : > { %v1393_v5 = vsel %vm559_vm4, %v1388_v60, %v1386_v2  ;;  %1572 = vmatpush1.bf16.msra.mxu0 %v1357_v57  ;;  %v1389_v15 = vsel %vm559_vm4, %v1386_v2, %v1388_v60 }
 0x38b   : > { %1573 = vmatprep.subr.bf16.mxu0 %v1382_v4  ;;  %v1418_v31 = vmul.bf16 %v1416_v1, %v1393_v5  ;;  %v1417_v21 = vmul.bf16 %v1408_v9, %v1389_v15  ;;  %v2612_v9 = vld [vmem:[%s3477_s5 + $0x10] sm:$0xff]  ;;  %v2614_v15 = vcombine.low %v1632_v12, %v1632_v12 }
 0x38c   : > { %v1424_v11 = vpop.permute.xlu0 %1423 }
 0x38d   : > { %v1422_v17 = vpop.permute.xlu1 %1421  ;;  %v1639_v19 = vpack.i.b16 %v2614_v15, %v2614_v15 }
 0x38e   : > { %v1429_v20 = vsel %vm603_vm6, %v1424_v11, %v1422_v17  ;;  %1574 = vmatpush1.bf16.msra.mxu0 %v1381_v8  ;;  %v1425_v26 = vsel %vm603_vm6, %v1422_v17, %v1424_v11  ;;  %v2613_v8 = vld [vmem:[%s3477_s5 + $0x18] sm:$0xff]  ;;  %v1666_v11 = vld [vmem:[%s3473_s1] sm:$0x11] }
 0x38f   : > { %1575 = vmatprep.subr.bf16.mxu0 %v1418_v31  ;;  %v1452_v27 = vmul.bf16 %v1450_v13, %v1429_v20  ;;  %v1451_v34 = vmul.bf16 %v1443_v29, %v1425_v26  ;;  %v2616_v13 = vcombine.low %v1666_v11, %v1666_v11  ;;  %v2617_v14 = vcombine.high %v1666_v11, %v1666_v11  ;;  %v1736_v29 = vld [vmem:[%s3473_s1] sm:$0x22] }
 0x390   : > { %v1458_v22 = vpop.permute.xlu0 %1457  ;;  %v2615_v31 = vcombine.high %v1632_v12, %v1632_v12  ;;  %v2621_v32 = vcombine.high %v1736_v29, %v1736_v29 }
 0x391   : > { %v1456_v30 = vpop.permute.xlu1 %1455  ;;  %v1673_v17 = vshrl.u32 %v2616_v13, 16  ;;  %v1681_v18 = vshrl.u32 %v2617_v14, 16  ;;  %v1832_v13 = vld [vmem:[%s3473_s1] sm:$0x88] }
 0x392   : > { %v1463_v33 = vsel %vm639_vm5, %v1458_v22, %v1456_v30  ;;  %1576 = vmatpush1.bf16.msra.mxu0 %v1417_v21  ;;  %v1459_v38 = vsel %vm639_vm5, %v1456_v30, %v1458_v22  ;;  %v1646_v20 = vpack.i.b16 %v2615_v31, %v2615_v31  ;;  %v1702_v21 = vld [vmem:[%s3473_s1] sm:$0x22]  ;;  %v2620_v30 = vcombine.low %v1736_v29, %v1736_v29 }
 0x393   : > { %1577 = vmatprep.subr.bf16.mxu0 %v1452_v27  ;;  %v1488_v40 = vmul.bf16 %v1486_v28, %v1463_v33  ;;  %v1487_v42 = vmul.bf16 %v1478_v35, %v1459_v38  ;;  %v1674_v22 = vpack.i.b16 %v1673_v17, %v1673_v17  ;;  %v1682_v23 = vpack.i.b16 %v1681_v18, %v1681_v18  ;;  %v1866_v17 = vld [vmem:[%s3473_s1] sm:$0x88] }
 0x394   : > { %v1494_v54 = vpop.permute.xlu0 %1493  ;;  %v2618_v24 = vcombine.low %v1702_v21, %v1702_v21  ;;  %v2619_v26 = vcombine.high %v1702_v21, %v1702_v21  ;;  %v1644_v27 = vrot.slane %v1639_v19, %v2932_v36  ;;  %v1651_v28 = vrot.slane %v1646_v20, %v2932_v36 }
 0x395   : > { %v1492_v41 = vpop.permute.xlu1 %1491  ;;  %v1679_v35 = vrot.slane %v1674_v22, %v2932_v36 }
 0x396   : > { %v1499_v52 = vsel %vm683_vm7, %v1494_v54, %v1492_v41  ;;  %1578 = vmatpush1.bf16.msra.mxu0 %v1451_v34  ;;  %v1495_v44 = vsel %vm683_vm7, %v1492_v41, %v1494_v54  ;;  %v1687_v54 = vrot.slane %v1682_v23, %v2932_v36  ;;  %v1796_v41 = vld [vmem:[%s3473_s1] sm:$0x44] }
 0x397   : > { %1579 = vmatprep.subr.bf16.mxu0 %v1488_v40  ;;  %v1522_v45 = vmul.bf16 %v1520_v7, %v1499_v52  ;;  %v1521_v46 = vmul.bf16 %v1513_v43, %v1495_v44  ;;  %v1709_v40 = vpack.i.b16 %v2618_v24, %v2618_v24  ;;  %v1716_v7 = vpack.i.b16 %v2619_v26, %v2619_v26  ;;  %v1762_v52 = vld [vmem:[%s3473_s1] sm:$0x44] }
 0x398   : > { %v1743_v44 = vshrl.u32 %v2620_v30, 16  ;;  %v2627_v24 = vcombine.high %v1832_v13, %v1832_v13 }
 0x39a   : > { %1580 = vmatpush1.bf16.msra.mxu0 %v1487_v42 }
 0x39b   : > { %1581 = vmatprep.subr.bf16.mxu0 %v1522_v45  ;;  %v1751_v45 = vshrl.u32 %v2621_v32, 16 }
 0x39d   : > { %v1752_v6 = vpack.i.b16 %v1751_v45, %v1751_v45 }
 0x39e   : > { %1582 = vmatpush1.bf16.msra.mxu0 %v1521_v46 }
 0x39f   : > { %v1757_v29 = vrot.slane %v1752_v6, %v2935_v39 }
 0x3a1   : > { %1598 = vmatmul.mubr.bf16.vlgmr.msra.gmra.mrb[4].mxu0 %v2744_v47 }
 0x3a5   : > { %v1551_v58 = vpop.permute.xlu0 %1550 }
 0x3a6   : > { %v1546_v48 = vpop.permute.xlu1 %1545 }
 0x474   : > { %v1599_v55 = vpop.f32.mrb[4].mxu0 }
 0x475   : > { %v1600_v56 = vadd.f32 %v1599_v55, %v1546_v48  ;;  %v1601_v57 = vpop.f32.mrb[5].mxu0  ;;  %v2623_v55 = vcombine.high %v1762_v52, %v1762_v52 }
 0x476   : > { %v1602_v59 = vadd.f32 %v1601_v57, %v1546_v48  ;;  %v1603_v60 = vpop.f32.mrb[6].mxu0  ;;  %v2625_v48 = vcombine.high %v1796_v41, %v1796_v41 }
 0x477   : > { %v1604_v61 = vadd.f32 %v1603_v60, %v1551_v58  ;;  %v1605_v62 = vpop.f32.mrb[7].mxu0  ;;  %v3221_v0 = vadd.f32 %v1600_v56, %v2984_v49  ;;  %v2622_v56 = vcombine.low %v1762_v52, %v1762_v52  ;;  %v1721_v60 = vrot.slane %v1716_v7, %v2935_v39 }
 0x478   : > { %v1606_v63 = vadd.f32 %v1605_v62, %v1551_v58  ;;  %v3227_v2 = vadd.f32 %v1602_v59, %v2988_v51  ;;  %v1714_v59 = vrot.slane %v1709_v40, %v2935_v39  ;;  %v1811_v12 = vshrl.u32 %v2625_v48, 16 }
 0x479   : > { %v3224_v1 = vadd.f32 %v1604_v61, %v2986_v50  ;;  %v1776_v14 = vpack.i.b16 %v2623_v55, %v2623_v55  ;;  %v1769_v18 = vpack.i.b16 %v2622_v56, %v2622_v56  ;;  %v2626_v40 = vcombine.low %v1832_v13, %v1832_v13 }
 0x47a   : > { %v3230_v3 = vadd.f32 %v1606_v63, %v2994_v53  ;;  %v1744_v63 = vpack.i.b16 %v1743_v44, %v1743_v44  ;;  %v1846_v7 = vpack.i.b16 %v2627_v24, %v2627_v24 }
 0x47b   : > { %v3234_v4 = vpack.c.bf16 %v3224_v1, %v3221_v0  ;;  %v1781_v30 = vrot.slane %v1776_v14, %v2891_v10  ;;  %v1839_v56 = vpack.i.b16 %v2626_v40, %v2626_v40 }
 0x47c   : > { %v3238_v5 = vpack.c.bf16 %v3230_v3, %v3227_v2  ;;  %v1749_v21 = vrot.slane %v1744_v63, %v2935_v39 }
 0x47d   : > { %1624 = vrot.lane.b32.xlu0 %v3234_v4, %s2797_s21 }
 0x47e   : > { %1621 = vrot.lane.b32.xlu1 %v3238_v5, %s2797_s21  ;;  %v1783_v44 = vmul.bf16 %v1781_v30, %v3238_v5 }
 0x481   : > { %1658 = vrot.lane.b32.xlu0 %v3234_v4, %s2798_s22 }
 0x482   : > { %1656 = vrot.lane.b32.xlu1 %v3238_v5, %s2798_s22 }
 0x485   : > { %1694 = vrot.lane.b32.xlu0 %v3234_v4, %s2800_s24 }
 0x486   : > { %1692 = vrot.lane.b32.xlu1 %v3238_v5, %s2800_s24 }
 0x489   : > { %1728 = vrot.lane.b32.xlu0 %v3234_v4, %s2799_s23 }
 0x48a   : > { %1726 = vrot.lane.b32.xlu1 %v3238_v5, %s2799_s23 }
 0x48d   : > { %1788 = vrot.lane.b32.xlu0 %v3238_v5, %s2801_s25 }
 0x48e   : > { %1786 = vrot.lane.b32.xlu1 %v3234_v4, %s2801_s25 }
 0x491   : > { %1824 = vrot.lane.b32.xlu0 %v3238_v5, %s2803_s27 }
 0x492   : > { %1822 = vrot.lane.b32.xlu1 %v3234_v4, %s2803_s27 }
 0x495   : > { %1858 = vrot.lane.b32.xlu0 %v3238_v5, %s2802_s26 }
 0x496   : > { %1856 = vrot.lane.b32.xlu1 %v3234_v4, %s2802_s26 }
 0x499   : > { %1894 = vrot.lane.b32.xlu0 %v3238_v5, %s3486_s15 }
 0x49a   : > { %1892 = vrot.lane.b32.xlu1 %v3234_v4, %s3486_s15 }
 0x49d   : > { %1951 = vperm.xlu0 %2682, %v2613_v8  }
 0x49e   : > { %1946 = vperm.xlu1 %2683, %v2612_v9   ;;  %v2624_v9 = vcombine.low %v1796_v41, %v1796_v41  ;;  %v2628_v41 = vcombine.low %v1866_v17, %v1866_v17 }
 0x4a0   : > { %v1803_v23 = vshrl.u32 %v2624_v9, 16 }
 0x4ef   : > { %v1625_v33 = vpop.permute.xlu0 %1624 }
 0x4f0   : > { %v1622_v34 = vpop.permute.xlu1 %1621 }
 0x4f1   : > { %v1626_v37 = vsel %vm375_vm0, %v1625_v33, %v1622_v34  ;;  %v1630_v38 = vsel %vm375_vm0, %v1622_v34, %v1625_v33 }
 0x4f2   : > { %v1652_v42 = vmul.bf16 %v1644_v27, %v1630_v38  ;;  %v1653_v43 = vmul.bf16 %v1651_v28, %v1626_v37  ;;  %v1812_v27 = vpack.i.b16 %v1811_v12, %v1811_v12  ;;  %v2629_v28 = vcombine.high %v1866_v17, %v1866_v17 }
 0x4f3   : > { %v1659_v46 = vpop.permute.xlu0 %1658  ;;  %v1804_v38 = vpack.i.b16 %v1803_v23, %v1803_v23 }
 0x4f4   : > { %v1657_v47 = vpop.permute.xlu1 %1656  ;;  %1966 = vmatprep.subr.bf16.mxu1 %v1653_v43  ;;  %v1817_v52 = vrot.slane %v1812_v27, %v2891_v10  ;;  %v1881_v43 = vshrl.u32 %v2629_v28, 16 }
 0x4f5   : > { %v1660_v57 = vsel %vm411_vm1, %v1659_v46, %v1657_v47  ;;  %v1664_v58 = vsel %vm411_vm1, %v1657_v47, %v1659_v46  ;;  %1967 = vmatpush1.bf16.msra.mxu1 %v1652_v42  ;;  %v1902_v46 = vld [vmem:[%s3473_s1 + $0x8] sm:$0x11]  ;;  %v1809_v48 = vrot.slane %v1804_v38, %v2891_v10 }
 0x4f6   : > { %v1688_v61 = vmul.bf16 %v1679_v35, %v1664_v58  ;;  %v1689_v62 = vmul.bf16 %v1687_v54, %v1660_v57  ;;  %v1774_v54 = vrot.slane %v1769_v18, %v2891_v10  ;;  %v1851_v57 = vrot.slane %v1846_v7, %v2958_v25 }
 0x4f7   : > { %v1695_v8 = vpop.permute.xlu0 %1694  ;;  %v1873_v58 = vshrl.u32 %v2628_v41, 16 }
 0x4f8   : > { %v1693_v11 = vpop.permute.xlu1 %1692  ;;  %1968 = vmatprep.subr.bf16.mxu1 %v1689_v62  ;;  %v1782_v47 = vmul.bf16 %v1774_v54, %v3234_v4  ;;  %v2631_v62 = vcombine.high %v1902_v46, %v1902_v46  ;;  %v1844_v4 = vrot.slane %v1839_v56, %v2958_v25 }
 0x4f9   : > { %v1696_v15 = vsel %vm455_vm3, %v1695_v8, %v1693_v11  ;;  %v1700_v31 = vsel %vm455_vm3, %v1693_v11, %v1695_v8  ;;  %1969 = vmatpush1.bf16.msra.mxu1 %v1688_v61  ;;  %v1882_v61 = vpack.i.b16 %v1881_v43, %v1881_v43  ;;  %v1874_v9 = vpack.i.b16 %v1873_v58, %v1873_v58 }
 0x4fa   : > { %v1722_v19 = vmul.bf16 %v1714_v59, %v1700_v31  ;;  %v1723_v20 = vmul.bf16 %v1721_v60, %v1696_v15  ;;  %v2630_v11 = vcombine.low %v1902_v46, %v1902_v46  ;;  %v1916_v31 = vpack.i.b16 %v2631_v62, %v2631_v62 }
 0x4fb   : > { %v1729_v22 = vpop.permute.xlu0 %1728  ;;  %v1887_v14 = vrot.slane %v1882_v61, %v2958_v25 }
 0x4fc   : > { %v1727_v26 = vpop.permute.xlu1 %1726  ;;  %1970 = vmatprep.subr.bf16.mxu1 %v1723_v20  ;;  %v1921_v23 = vrot.slane %v1916_v31, %v2932_v36 }
 0x4fd   : > { %v1730_v32 = vsel %vm491_vm2, %v1729_v22, %v1727_v26  ;;  %v1734_v33 = vsel %vm491_vm2, %v1727_v26, %v1729_v22  ;;  %1971 = vmatpush1.bf16.msra.mxu1 %v1722_v19  ;;  %v1879_v19 = vrot.slane %v1874_v9, %v2958_v25  ;;  %v2784_v9 = vld [vmem:[%s3478_s6 + $0x14] ss:$8 sps:$4 sm:$0xff]  }
 0x4fe   : > { %v1758_v34 = vmul.bf16 %v1749_v21, %v1734_v33  ;;  %v1759_v35 = vmul.bf16 %v1757_v29, %v1730_v32  ;;  %v1909_v21 = vpack.i.b16 %v2630_v11, %v2630_v11  ;;  %2659 = vmatprep.mubr.msk.bf16.mxu0 %vm411_vm1, %v2784_v9  ;;  %v2638_v11 = vld [vmem:[%s3479_s7 + $0x18] sm:$0xff] }
 0x4ff   : > { %v1789_v37 = vpop.permute.xlu0 %1788 }
 0x500   : > { %v1787_v42 = vpop.permute.xlu1 %1786  ;;  %1972 = vmatprep.subr.bf16.mxu1 %v1759_v35  ;;  %v1914_v28 = vrot.slane %v1909_v21, %v2932_v36  ;;  %v2171_v35 = vld [vmem:[%s3473_s1] sm:$0x44] }
 0x501   : > { %v1794_v45 = vsel %vm559_vm4, %v1789_v37, %v1787_v42  ;;  %1973 = vmatpush1.bf16.msra.mxu1 %v1758_v34  ;;  %v1790_v59 = vsel %vm559_vm4, %v1787_v42, %v1789_v37  ;;  %v2765_v34 = vld [vmem:[%s3476_s4 + $0x10] ss:$8 sps:$4 sm:$0xff]   ;;  %v2647_v54 = vcombine.low %v2171_v35, %v2171_v35  ;;  %v2648_v37 = vcombine.high %v2171_v35, %v2171_v35 }
 0x502   : > { %1974 = vmatprep.subr.bf16.mxu1 %v1783_v44  ;;  %v1819_v5 = vmul.bf16 %v1817_v52, %v1794_v45  ;;  %v1818_v6 = vmul.bf16 %v1809_v48, %v1790_v59 }
 0x503   : > { %v1825_v55 = vpop.permute.xlu0 %1824  ;;  %v2178_v44 = vpack.i.b16 %v2647_v54, %v2647_v54  ;;  %v2185_v48 = vpack.i.b16 %v2648_v37, %v2648_v37 }
 0x504   : > { %v1823_v60 = vpop.permute.xlu1 %1822 }
 0x505   : > { %v1830_v63 = vsel %vm603_vm6, %v1825_v55, %v1823_v60  ;;  %1975 = vmatpush1.bf16.msra.mxu1 %v1782_v47  ;;  %v1826_v12 = vsel %vm603_vm6, %v1823_v60, %v1825_v55  ;;  %v2183_v58 = vrot.slane %v2178_v44, %v2891_v10  ;;  %v2190_v60 = vrot.slane %v2185_v48, %v2891_v10 }
 0x506   : > { %1976 = vmatprep.subr.bf16.mxu1 %v1819_v5  ;;  %v1853_v13 = vmul.bf16 %v1851_v57, %v1830_v63  ;;  %v1852_v18 = vmul.bf16 %v1844_v4, %v1826_v12  ;;  %v2637_v12 = vld [vmem:[%s3479_s7 + $0x10] sm:$0xff] }
 0x507   : > { %v1859_v8 = vpop.permute.xlu0 %1858 }
 0x508   : > { %v1857_v15 = vpop.permute.xlu1 %1856 }
 0x509   : > { %v1864_v17 = vsel %vm639_vm5, %v1859_v8, %v1857_v15  ;;  %1977 = vmatpush1.bf16.msra.mxu1 %v1818_v6  ;;  %v1860_v29 = vsel %vm639_vm5, %v1857_v15, %v1859_v8  ;;  %v2041_v15 = vld [vmem:[%s3473_s1] sm:$0x11] }
 0x50a   : > { %1978 = vmatprep.subr.bf16.mxu1 %v1853_v13  ;;  %v1889_v22 = vmul.bf16 %v1887_v14, %v1864_v17  ;;  %v1888_v27 = vmul.bf16 %v1879_v19, %v1860_v29  ;;  %v2429_v13 = vld [vmem:[%s3481_s9] sm:$0xff]  ;;  %v2640_v19 = vcombine.high %v2041_v15, %v2041_v15 }
 0x50b   : > { %v1895_v20 = vpop.permute.xlu0 %1894  ;;  %v2075_v14 = vld [vmem:[%s3473_s1] sm:$0x11] }
 0x50c   : > { %v1893_v24 = vpop.permute.xlu1 %1892  ;;  %v2641_v31 = vcombine.low %v2075_v14, %v2075_v14  ;;  %v2642_v17 = vcombine.high %v2075_v14, %v2075_v14 }
 0x50d   : > { %v1900_v26 = vsel %vm683_vm7, %v1895_v20, %v1893_v24  ;;  %1979 = vmatpush1.bf16.msra.mxu1 %v1852_v18  ;;  %v1896_v30 = vsel %vm683_vm7, %v1893_v24, %v1895_v20  ;;  %v2639_v18 = vcombine.low %v2041_v15, %v2041_v15  ;;  %v2145_v24 = vld [vmem:[%s3473_s1] sm:$0x22] }
 0x50e   : > { %1980 = vmatprep.subr.bf16.mxu1 %v1889_v22  ;;  %v1923_v32 = vmul.bf16 %v1921_v23, %v1900_v26  ;;  %v1922_v33 = vmul.bf16 %v1914_v28, %v1896_v30  ;;  %v2082_v20 = vshrl.u32 %v2641_v31, 16  ;;  %v2090_v21 = vshrl.u32 %v2642_v17, 16  ;;  %v2111_v23 = vld [vmem:[%s3473_s1] sm:$0x22] }
 0x50f   : > { %v2048_v29 = vpack.i.b16 %v2639_v18, %v2639_v18  ;;  %v2055_v22 = vpack.i.b16 %v2640_v19, %v2640_v19  ;;  %v2643_v28 = vcombine.low %v2111_v23, %v2111_v23  ;;  %v2644_v30 = vcombine.high %v2111_v23, %v2111_v23 }
 0x510   : > { %v2083_v26 = vpack.i.b16 %v2082_v20, %v2082_v20  ;;  %v2645_v35 = vcombine.low %v2145_v24, %v2145_v24  ;;  %v2646_v54 = vcombine.high %v2145_v24, %v2145_v24 }
 0x511   : > { %1981 = vmatpush1.bf16.msra.mxu1 %v1888_v27  ;;  %v2091_v27 = vpack.i.b16 %v2090_v21, %v2090_v21  ;;  %v2118_v44 = vpack.i.b16 %v2643_v28, %v2643_v28 }
 0x512   : > { %1982 = vmatprep.subr.bf16.mxu1 %v1923_v32  ;;  %v2205_v32 = vld [vmem:[%s3473_s1] sm:$0x44]  ;;  %v2152_v48 = vshrl.u32 %v2645_v35, 16 }
 0x514   : > { %v2153_v9 = vpack.i.b16 %v2152_v48, %v2152_v48 }
 0x515   : > { %1983 = vmatpush1.bf16.msra.mxu1 %v1922_v33  ;;  %v2053_v33 = vrot.slane %v2048_v29, %v2932_v36 }
 0x516   : > { %v2158_v24 = vrot.slane %v2153_v9, %v2935_v39 }
 0x518   : > { %1999 = vmatmul.mubr.bf16.vlgmr.msra.gmra.mrb[4].mxu1 %v2765_v34  ;;  %v2060_v34 = vrot.slane %v2055_v22, %v2932_v36 }
 0x519   : > { %2470 = vmatprep.mubr.bf16.mxu1 %v2805_v16 }
 0x51c   : > { %v1952_v52 = vpop.permute.xlu0 %1951 }
 0x51d   : > { %v1947_v38 = vpop.permute.xlu1 %1946 }
 0x5eb   : > { %v2000_v40 = vpop.f32.mrb[4].mxu1 }
 0x5ec   : > { %v2001_v7 = vadd.f32 %v2000_v40, %v1947_v38  ;;  %v2002_v41 = vpop.f32.mrb[5].mxu1  ;;  %v2088_v40 = vrot.slane %v2083_v26, %v2932_v36 }
 0x5ed   : > { %v2003_v42 = vadd.f32 %v2002_v41, %v1947_v38  ;;  %v2004_v43 = vpop.f32.mrb[6].mxu1  ;;  %v2649_v41 = vcombine.low %v2205_v32, %v2205_v32 }
 0x5ee   : > { %v2013_v45 = vmul.f32 0.01, %v2001_v7  ;;  %v2005_v46 = vadd.f32 %v2004_v43, %v1952_v52  ;;  %v2006_v47 = vpop.f32.mrb[7].mxu1  ;;  %vm2009_vm10 = vcmp.ge.f32.partialorder %v2001_v7, 0.0 }
 0x5ef   : > { %v2014_v16 = vmul.f32 0.01, %v2003_v42  ;;  %v2007_v55 = vadd.f32 %v2006_v47, %v1952_v52  ;;  %vm2010_vm11 = vcmp.ge.f32.partialorder %v2003_v42, 0.0  ;;  %v2650_v52 = vcombine.high %v2205_v32, %v2205_v32 }
 0x5f0   : > { %vm2011_vm12 = vcmp.ge.f32.partialorder %v2005_v46, 0.0  ;;  %v2015_v56 = vmul.f32 0.01, %v2005_v46  ;;  %v2017_v59 = vsel %vm2009_vm10, %v2001_v7, %v2013_v45  ;;  %v2096_v7 = vrot.slane %v2091_v27, %v2932_v36 }
 0x5f1   : > { %vm2012_vm13 = vcmp.ge.f32.partialorder %v2007_v55, 0.0  ;;  %v2016_v57 = vmul.f32 0.01, %v2007_v55  ;;  %v2018_v61 = vsel %vm2010_vm11, %v2003_v42, %v2014_v16  ;;  %v2125_v45 = vpack.i.b16 %v2644_v30, %v2644_v30 }
 0x5f2   : > { %v2019_v5 = vsel %vm2011_vm12, %v2005_v46, %v2015_v56  ;;  %v2160_v16 = vshrl.u32 %v2646_v54, 16 }
 0x5f3   : > { %v2027_v62 = vpack.c.bf16 %v2019_v5, %v2017_v59  ;;  %v2020_v63 = vsel %vm2012_vm13, %v2007_v55, %v2016_v57  ;;  %v2212_v57 = vshrl.u32 %v2649_v41, 16  ;;  %v2311_v41 = vld [vmem:[%s3473_s1 + $0x8] sm:$0x11] }
 0x5f4   : > { %v2028_v6 = vpack.c.bf16 %v2020_v63, %v2018_v61  ;;  %v2130_v61 = vrot.slane %v2125_v45, %v2935_v39 }
 0x5f5   : > { %2033 = vrot.lane.b32.xlu0 %v2027_v62, %s2797_s21  ;;  %v3355_v4 = vmul.bf16 %v2183_v58, %v2027_v62  ;;  %v2220_v58 = vshrl.u32 %v2650_v52, 16  ;;  %v2213_v15 = vpack.i.b16 %v2212_v57, %v2212_v57 }
 0x5f6   : > { %2030 = vrot.lane.b32.xlu1 %v2028_v6, %s2797_s21  ;;  %v3358_v8 = vmul.bf16 %v2190_v60, %v2028_v6  ;;  %v2123_v60 = vrot.slane %v2118_v44, %v2935_v39 }
 0x5f7   : > { %2193 = vst [vmem:[#allocation2 + $0x40] sm:$0xff] %v3355_v4  ;;  %v2221_v31 = vpack.i.b16 %v2220_v58, %v2220_v58 }
 0x5f8   : > { %2194 = vst [vmem:[#allocation2 + $0x48] sm:$0xff] %v3358_v8 }
 0x5f9   : > { %2067 = vrot.lane.b32.xlu0 %v2027_v62, %s2798_s22 }
 0x5fa   : > { %2065 = vrot.lane.b32.xlu1 %v2028_v6, %s2798_s22 }
 0x5fd   : > { %2103 = vrot.lane.b32.xlu0 %v2027_v62, %s2800_s24 }
 0x5fe   : > { %2101 = vrot.lane.b32.xlu1 %v2028_v6, %s2800_s24 }
 0x601   : > { %2137 = vrot.lane.b32.xlu0 %v2027_v62, %s2799_s23 }
 0x602   : > { %2135 = vrot.lane.b32.xlu1 %v2028_v6, %s2799_s23 }
 0x605   : > { %2197 = vrot.lane.b32.xlu0 %v2028_v6, %s2801_s25 }
 0x606   : > { %2195 = vrot.lane.b32.xlu1 %v2027_v62, %s2801_s25 }
 0x609   : > { %2233 = vrot.lane.b32.xlu0 %v2028_v6, %s2803_s27 }
 0x60a   : > { %2231 = vrot.lane.b32.xlu1 %v2027_v62, %s2803_s27 }
 0x60d   : > { %2267 = vrot.lane.b32.xlu0 %v2028_v6, %s2802_s26 }
 0x60e   : > { %2265 = vrot.lane.b32.xlu1 %v2027_v62, %s2802_s26 }
 0x611   : > { %2303 = vrot.lane.b32.xlu0 %v2028_v6, %s3486_s15 }
 0x612   : > { %2301 = vrot.lane.b32.xlu1 %v2027_v62, %s3486_s15  ;;  %v2241_v62 = vld [vmem:[%s3473_s1] sm:$0x88] }
 0x613   : > { %v2651_v17 = vcombine.low %v2241_v62, %v2241_v62  ;;  %v2652_v18 = vcombine.high %v2241_v62, %v2241_v62 }
 0x615   : > { %2360 = vperm.xlu0 %2682, %v2638_v11   ;;  %v2161_v11 = vpack.i.b16 %v2160_v16, %v2160_v16  ;;  %v2248_v30 = vpack.i.b16 %v2651_v17, %v2651_v17  ;;  %v2255_v32 = vpack.i.b16 %v2652_v18, %v2652_v18  ;;  %v2655_v16 = vcombine.low %v2311_v41, %v2311_v41 }
 0x616   : > { %2355 = vperm.xlu1 %2683, %v2637_v12   ;;  %v2275_v12 = vld [vmem:[%s3473_s1] sm:$0x88] }
 0x617   : > { %v2653_v21 = vcombine.low %v2275_v12, %v2275_v12  ;;  %v2654_v29 = vcombine.high %v2275_v12, %v2275_v12  ;;  %v2166_v26 = vrot.slane %v2161_v11, %v2935_v39  ;;  %v2226_v39 = vrot.slane %v2221_v31, %v2891_v10 }
 0x619   : > { %v2282_v35 = vshrl.u32 %v2653_v21, 16  ;;  %v2290_v54 = vshrl.u32 %v2654_v29, 16  ;;  %v2786_v21 = vld [vmem:[%s3478_s6 + $0x10] ss:$8 sps:$4 sm:$0xff]  }
 0x61a   : > { %2432 = vperm.xlu1 %2683, %v2429_v13  }
 0x667   : > { %v2034_v37 = vpop.permute.xlu0 %2033 }
 0x668   : > { %v2031_v38 = vpop.permute.xlu1 %2030 }
 0x669   : > { %v2035_v42 = vsel %vm375_vm0, %v2034_v37, %v2031_v38  ;;  %v2039_v43 = vsel %vm375_vm0, %v2031_v38, %v2034_v37 }
 0x66a   : > { %v2061_v46 = vmul.bf16 %v2053_v33, %v2039_v43  ;;  %v2062_v47 = vmul.bf16 %v2060_v34, %v2035_v42  ;;  %v2253_v42 = vrot.slane %v2248_v30, %v2958_v25  ;;  %v2260_v43 = vrot.slane %v2255_v32, %v2958_v25 }
 0x66b   : > { %v2068_v55 = vpop.permute.xlu0 %2067 }
 0x66c   : > { %2063 = vst [vmem:[#allocation2] sm:$0xff] %v2061_v46  ;;  %2064 = vst [vmem:[#allocation2 + $0x8] sm:$0xff] %v2062_v47  ;;  %v2066_v56 = vpop.permute.xlu1 %2065  ;;  %2375 = vmatprep.subr.bf16.mxu0 %v2062_v47  ;;  %v2291_v47 = vpack.i.b16 %v2290_v54, %v2290_v54 }
 0x66d   : > { %v2069_v59 = vsel %vm411_vm1, %v2068_v55, %v2066_v56  ;;  %v2073_v5 = vsel %vm411_vm1, %v2066_v56, %v2068_v55  ;;  %2376 = vmatpush1.bf16.msra.mxu0 %v2061_v46  ;;  %v2283_v46 = vpack.i.b16 %v2282_v35, %v2282_v35  ;;  %v2656_v55 = vcombine.high %v2311_v41, %v2311_v41  ;;  %v2787_v41 = vld [vmem:[%s2877_s18] sm:$0xff] }
 0x66e   : > { %v2097_v63 = vmul.bf16 %v2088_v40, %v2073_v5  ;;  %v2098_v6 = vmul.bf16 %v2096_v7, %v2069_v59  ;;  %v2218_v40 = vrot.slane %v2213_v15, %v2891_v10 }
 0x66f   : > { %v2104_v13 = vpop.permute.xlu0 %2103  ;;  %v2288_v5 = vrot.slane %v2283_v46, %v2958_v25 }
 0x670   : > { %2099 = vst [vmem:[#allocation2 + $0x10] sm:$0xff] %v2097_v63  ;;  %2100 = vst [vmem:[#allocation2 + $0x18] sm:$0xff] %v2098_v6  ;;  %v2102_v14 = vpop.permute.xlu1 %2101  ;;  %2377 = vmatprep.subr.bf16.mxu0 %v2098_v6  ;;  %v2325_v6 = vpack.i.b16 %v2656_v55, %v2656_v55 }
 0x671   : > { %v2105_v19 = vsel %vm455_vm3, %v2104_v13, %v2102_v14  ;;  %v2109_v20 = vsel %vm455_vm3, %v2102_v14, %v2104_v13  ;;  %2378 = vmatpush1.bf16.msra.mxu0 %v2097_v63  ;;  %v2318_v63 = vpack.i.b16 %v2655_v16, %v2655_v16 }
 0x672   : > { %v2131_v22 = vmul.bf16 %v2123_v60, %v2109_v20  ;;  %v2132_v23 = vmul.bf16 %v2130_v61, %v2105_v19  ;;  %v2296_v60 = vrot.slane %v2291_v47, %v2958_v25  ;;  %v2330_v25 = vrot.slane %v2325_v6, %v2932_v36 }
 0x673   : > { %v2138_v27 = vpop.permute.xlu0 %2137  ;;  %v2323_v15 = vrot.slane %v2318_v63, %v2932_v36 }
 0x674   : > { %2133 = vst [vmem:[#allocation2 + $0x20] sm:$0xff] %v2131_v22  ;;  %2134 = vst [vmem:[#allocation2 + $0x28] sm:$0xff] %v2132_v23  ;;  %v2136_v28 = vpop.permute.xlu1 %2135  ;;  %2379 = vmatprep.subr.bf16.mxu0 %v2132_v23 }
 0x675   : > { %v2139_v33 = vsel %vm491_vm2, %v2138_v27, %v2136_v28  ;;  %v2143_v34 = vsel %vm491_vm2, %v2136_v28, %v2138_v27  ;;  %2380 = vmatpush1.bf16.msra.mxu0 %v2131_v22 }
 0x676   : > { %v2167_v37 = vmul.bf16 %v2158_v24, %v2143_v34  ;;  %v2168_v38 = vmul.bf16 %v2166_v26, %v2139_v33 }
 0x677   : > { %v2198_v7 = vpop.permute.xlu0 %2197 }
 0x678   : > { %2169 = vst [vmem:[#allocation2 + $0x30] sm:$0xff] %v2167_v37  ;;  %2170 = vst [vmem:[#allocation2 + $0x38] sm:$0xff] %v2168_v38  ;;  %v2196_v52 = vpop.permute.xlu1 %2195  ;;  %2381 = vmatprep.subr.bf16.mxu0 %v2168_v38 }
 0x679   : > { %v2199_v44 = vsel %vm559_vm4, %v2196_v52, %v2198_v7  ;;  %v2203_v45 = vsel %vm559_vm4, %v2198_v7, %v2196_v52  ;;  %2382 = vmatpush1.bf16.msra.mxu0 %v2167_v37 }
 0x67a   : > { %v2227_v10 = vmul.bf16 %v2218_v40, %v2199_v44  ;;  %v2228_v48 = vmul.bf16 %v2226_v39, %v2203_v45  ;;  %2383 = vmatprep.subr.bf16.mxu0 %v3358_v8 }
 0x67b   : > { %v2234_v56 = vpop.permute.xlu0 %2233 }
 0x67c   : > { %v2232_v57 = vpop.permute.xlu1 %2231 }
 0x67d   : > { %v2235_v58 = vsel %vm603_vm6, %v2232_v57, %v2234_v56  ;;  %v2239_v59 = vsel %vm603_vm6, %v2234_v56, %v2232_v57  ;;  %2384 = vmatpush1.bf16.msra.mxu0 %v3355_v4 }
 0x67e   : > { %v2261_v61 = vmul.bf16 %v2253_v42, %v2235_v58  ;;  %v2262_v62 = vmul.bf16 %v2260_v43, %v2239_v59  ;;  %2385 = vmatprep.subr.bf16.mxu0 %v2228_v48  ;;  %v2788_v43 = vld [vmem:[%s2877_s18 + $0x8] sm:$0xff] }
 0x67f   : > { %v2268_v8 = vpop.permute.xlu0 %2267 }
 0x680   : > { %v2266_v9 = vpop.permute.xlu1 %2265 }
 0x681   : > { %v2269_v11 = vsel %vm639_vm5, %v2266_v9, %v2268_v8  ;;  %v2273_v12 = vsel %vm639_vm5, %v2268_v8, %v2266_v9  ;;  %2386 = vmatpush1.bf16.msra.mxu0 %v2227_v10 }
 0x682   : > { %v2297_v13 = vmul.bf16 %v2288_v5, %v2269_v11  ;;  %v2298_v14 = vmul.bf16 %v2296_v60, %v2273_v12  ;;  %2387 = vmatprep.subr.bf16.mxu0 %v2262_v62 }
 0x683   : > { %v2304_v4 = vpop.permute.xlu0 %2303 }
 0x684   : > { %v2302_v31 = vpop.permute.xlu1 %2301 }
 0x685   : > { %v2305_v17 = vsel %vm683_vm7, %v2302_v31, %v2304_v4  ;;  %v2309_v18 = vsel %vm683_vm7, %v2304_v4, %v2302_v31  ;;  %2388 = vmatpush1.bf16.msra.mxu0 %v2261_v61 }
 0x686   : > { %v2331_v19 = vmul.bf16 %v2323_v15, %v2305_v17  ;;  %v2332_v20 = vmul.bf16 %v2330_v25, %v2309_v18  ;;  %2389 = vmatprep.subr.bf16.mxu0 %v2298_v14 }
 0x689   : > { %2390 = vmatpush1.bf16.msra.mxu0 %v2297_v13 }
 0x68a   : > { %2391 = vmatprep.subr.bf16.mxu0 %v2332_v20 }
 0x68d   : > { %2392 = vmatpush1.bf16.msra.mxu0 %v2331_v19 }
 0x690   : > { %2408 = vmatmul.mubr.bf16.vlgmr.msra.gmra.mrb[8].mxu0 %v2786_v21 }
 0x694   : > { %v2361_v24 = vpop.permute.xlu0 %2360 }
 0x695   : > { %v2356_v36 = vpop.permute.xlu1 %2355 }
 0x763   : > { %v2409_v29 = vpop.f32.mrb[8].mxu0 }
 0x764   : > { %v2410_v22 = vadd.f32 %v2409_v29, %v2356_v36  ;;  %v2411_v23 = vpop.f32.mrb[9].mxu0 }
 0x765   : > { %v2412_v26 = vadd.f32 %v2411_v23, %v2356_v36  ;;  %v2413_v27 = vpop.f32.mrb[10].mxu0 }
 0x766   : > { %v2418_v28 = vadd.f32 %v2410_v22, %v3221_v0  ;;  %v2414_v30 = vadd.f32 %v2413_v27, %v2361_v24  ;;  %v2415_v32 = vpop.f32.mrb[11].mxu0 }
 0x767   : > { %v2419_v33 = vadd.f32 %v2412_v26, %v3227_v2  ;;  %v2416_v34 = vadd.f32 %v2415_v32, %v2361_v24  ;;  %v2433_v2 = vpop.permute.xlu1 %2432 }
 0x768   : > { %v2420_v35 = vadd.f32 %v2414_v30, %v3224_v1  ;;  %v2422_v37 = vadd.f32 %v2418_v28, %v2984_v49  ;;  %v2428_v1 = vld [vmem:[%s3480_s8] sm:$0xf] }
 0x769   : > { %v2421_v54 = vadd.f32 %v2416_v34, %v3230_v3  ;;  %v2423_v40 = vadd.f32 %v2419_v33, %v2988_v51 }
 0x76a   : > { %v2424_v38 = vadd.f32 %v2420_v35, %v2986_v50 }
 0x76b   : > { %v2425_v39 = vadd.f32 %v2421_v54, %v2994_v53 }
 0x76c   : > { %v2426_v0 = vpack.c.bf16 %v2424_v38, %v2422_v37 }
 0x76d   : > { %v2427_v7 = vpack.c.bf16 %v2425_v39, %v2423_v40 }
 0x76f   : > { %2438 = vmatprep.subr.bf16.mxu1 %v2427_v7 }
 0x770   : > { %2439 = vmatpush1.bf16.msra.mxu1 %v2426_v0 }
 0x773   : > { %2660 = vmatmul.mubr.msk.bf16.vlgmr.msra.gmra.mrb[8].mxu1 %vm411_vm1, %v2428_v1 }
 0x846   : > { %v2472_v49 = vpop.f32.mrb[8].mxu1 }
 0x847   : > { %v2473_v3 = vadd.f32 %v2472_v49, %v2433_v2  ;;  %v2474_v50 = vpop.f32.mrb[9].mxu1 }
 0x848   : > { %v2475_v51 = vadd.f32 %v2474_v50, %v2433_v2  ;;  %v2476_v53 = vpop.f32.mrb[10].mxu1 }
 0x849   : > { %v2479_v52 = vadd.f32 %v2787_v41, %v2473_v3  ;;  %v2477_v42 = vpop.f32.mrb[11].mxu1 }
 0x84a   : > { %v2480_v44 = vadd.f32 %v2788_v43, %v2475_v51 }
 0x84b   : > { %2481 = vst [vmem:[%s359_s19] sm:$0xff] %v2479_v52 }
 0x84c   : > { %2482 = vst [vmem:[%s359_s19 + $0x8] sm:$0xff] %v2480_v44 }
 0x84d PF: > { %s20_s13 = sadd.s32 1, %s2795_s13  }
 0x84e   : > { %p17_p4 = scmp.ge.s32.totalorder %s20_s13, 4  }
 0x850   :  { %19 = sbr.rel (!%p17_p4) target bundleno = 1 (0x1), region = 94 }

</bundles_post_ra>
